<compile_context>
chip_gen: v6e
topology: v6e:2x2x1
jax: 0.10.0
libtpu: 0.0.40
codegen_flags: <defaults>
</compile_context>

<pallas_src>
import jax
import jax.numpy as jnp
from jax.experimental import pallas as pl
from jax.experimental.pallas import tpu as pltpu

IN_FEATURES = 28 * 28
HIDDEN = 64
NUM_CLASSES = 10
OUT_PAD = 128          # lane-dense padded class width
NEG_BIG = -1e30        # bias for padded classes -> exp() == 0 in f32


def _round_up(n, m):
    return ((n + m - 1) // m) * m


def mlp_kernel(x_ref, w1_ref, b1_ref, w2_ref, b2_ref,
               w3_ref, b3_ref, w4_ref, b4_ref, o_ref):
    # x tile: (TB, 784) bf16; weights bf16; biases f32; accumulate in f32.
    h = jnp.dot(x_ref[...], w1_ref[...],
                preferred_element_type=jnp.float32) + b1_ref[...]
    h = jnp.maximum(h, 0.0)

    h = jnp.dot(h.astype(jnp.bfloat16), w2_ref[...],
                preferred_element_type=jnp.float32) + b2_ref[...]
    h = jnp.maximum(h, 0.0)

    h = jnp.dot(h.astype(jnp.bfloat16), w3_ref[...],
                preferred_element_type=jnp.float32) + b3_ref[...]
    h = jnp.maximum(h, 0.0)

    # fc4, padded to 128 output lanes (cols >= 10 carry bias -1e30).
    logits = jnp.dot(h.astype(jnp.bfloat16), w4_ref[...],
                     preferred_element_type=jnp.float32) + b4_ref[...]

    # numerically-stable log_softmax over the class axis (f32 epilogue).
    m = jnp.max(logits, axis=1, keepdims=True)
    shifted = logits - m
    lse = jnp.log(jnp.sum(jnp.exp(shifted), axis=1, keepdims=True))
    o_ref[...] = shifted - lse          # (TB, 128) lane-dense store


def mynet_forward(x, params, *, tile_b=512):
    """x: (B, 784) float32. params: dict of (in,out) weights and (1,out) biases."""
    B = x.shape[0]
    TB = _round_up(min(tile_b, max(B, 8)), 8)
    B_pad = _round_up(B, TB)

    if B_pad != B:
        x = jnp.pad(x, ((0, B_pad - B), (0, 0)))
    x = x.astype(jnp.bfloat16)

    w1 = params["w1"].astype(jnp.bfloat16)
    w2 = params["w2"].astype(jnp.bfloat16)
    w3 = params["w3"].astype(jnp.bfloat16)
    b1, b2, b3 = params["b1"], params["b2"], params["b3"]

    # Pad fc4 to a lane-dense 128-wide output; padded classes get a huge
    # negative bias so they vanish from the softmax sum.
    w4 = (jnp.zeros((HIDDEN, OUT_PAD), jnp.float32)
          .at[:, :NUM_CLASSES].set(params["w4"]).astype(jnp.bfloat16))
    b4 = (jnp.full((1, OUT_PAD), NEG_BIG, jnp.float32)
          .at[:, :NUM_CLASSES].set(params["b4"]))

    const = lambda i: (0, 0)   # weights/biases: single VMEM-resident block
    out = pl.pallas_call(
        mlp_kernel,
        out_shape=jax.ShapeDtypeStruct((B_pad, OUT_PAD), jnp.float32),
        grid=(B_pad // TB,),
        in_specs=[
            pl.BlockSpec((TB, IN_FEATURES), lambda i: (i, 0)),   # x streamed
            pl.BlockSpec((IN_FEATURES, HIDDEN), const),          # w1
            pl.BlockSpec((1, HIDDEN), const),                    # b1
            pl.BlockSpec((HIDDEN, HIDDEN), const),               # w2
            pl.BlockSpec((1, HIDDEN), const),                    # b2
            pl.BlockSpec((HIDDEN, HIDDEN), const),               # w3
            pl.BlockSpec((1, HIDDEN), const),                    # b3
            pl.BlockSpec((HIDDEN, OUT_PAD), const),              # w4 (padded)
            pl.BlockSpec((1, OUT_PAD), const),                   # b4 (padded)
        ],
        out_specs=pl.BlockSpec((TB, OUT_PAD), lambda i: (i, 0)),
        compiler_params=pltpu.CompilerParams(
            dimension_semantics=("parallel",)),
    )(x, w1, b1, w2, b2, w3, b3, w4, b4)

    return out[:B, :NUM_CLASSES]


def init_params(key):
    """Deterministic init matching PyTorch Linear's U(-1/sqrt(fan_in), 1/sqrt(fan_in))."""
    dims = [(IN_FEATURES, HIDDEN), (HIDDEN, HIDDEN),
            (HIDDEN, HIDDEN), (HIDDEN, NUM_CLASSES)]
    params = {}
    for i, (fan_in, fan_out) in enumerate(dims, start=1):
        key, kw, kb = jax.random.split(key, 3)
        bound = 1.0 / jnp.sqrt(float(fan_in))
        params[f"w{i}"] = jax.random.uniform(
            kw, (fan_in, fan_out), jnp.float32, minval=-bound, maxval=bound)
        params[f"b{i}"] = jax.random.uniform(
            kb, (1, fan_out), jnp.float32, minval=-bound, maxval=bound)
    return params


def ref_forward(x, p):
    h = jax.nn.relu(x @ p["w1"] + p["b1"])
    h = jax.nn.relu(h @ p["w2"] + p["b2"])
    h = jax.nn.relu(h @ p["w3"] + p["b3"])
    return jax.nn.log_softmax(h @ p["w4"] + p["b4"], axis=1)


if __name__ == "__main__":
    key = jax.random.PRNGKey(0)
    key, kx = jax.random.split(key)

    # small but non-trivial: 300 rows, 128-row tiles -> 3-step batch grid
    # (exercises padding to 384 rows and multi-tile pipelining).
    B = 300
    x = jax.random.normal(kx, (B, IN_FEATURES), dtype=jnp.float32)
    params = init_params(key)

    out = mynet_forward(x, params, tile_b=128)
    out = jax.block_until_ready(out)
    assert out.shape == (B, NUM_CLASSES)

    # sanity 1: log_softmax rows must log-sum-exp to ~0 (exact in f32 epilogue)
    row_lse = jax.scipy.special.logsumexp(out, axis=1)
    assert bool(jnp.all(jnp.abs(row_lse) < 1e-4))

    # sanity 2: probabilities match a pure-JAX reference (loose tolerance
    # because the kernel uses bf16 matmul operands)
    ref = ref_forward(x, params)
    assert bool(jnp.max(jnp.abs(jnp.exp(out) - jnp.exp(ref))) < 3e-2)

    print("KERNEL_OK")
</pallas_src>

<mosaic_0001>
module attributes {stable_mosaic.version = 11 : i64} {
  func.func @mlp_kernel(%arg0: i32, %arg1: memref<128x784xbf16, #tpu.memory_space<vmem>>, %arg2: memref<784x64xbf16, #tpu.memory_space<vmem>>, %arg3: memref<1x64xf32, #tpu.memory_space<vmem>>, %arg4: memref<64x64xbf16, #tpu.memory_space<vmem>>, %arg5: memref<1x64xf32, #tpu.memory_space<vmem>>, %arg6: memref<64x64xbf16, #tpu.memory_space<vmem>>, %arg7: memref<1x64xf32, #tpu.memory_space<vmem>>, %arg8: memref<64x128xbf16, #tpu.memory_space<vmem>>, %arg9: memref<1x128xf32, #tpu.memory_space<vmem>>, %arg10: memref<128x128xf32, #tpu.memory_space<vmem>>) attributes {dimension_semantics = [#tpu.dimension_semantics<parallel>], iteration_bounds = array<i64: 3>, scalar_prefetch = 0 : i64, scratch_operands = 0 : i64, tpu.core_type = #tpu.core_type<tc>, window_params = [{transform_indices = @transform_0, window_bounds = array<i64: 128, 784>}, {pipeline_mode = #tpu.pipeline_mode<synchronous>, transform_indices = @transform_1, window_bounds = array<i64: 784, 64>}, {pipeline_mode = #tpu.pipeline_mode<synchronous>, transform_indices = @transform_2, window_bounds = array<i64: 1, 64>}, {pipeline_mode = #tpu.pipeline_mode<synchronous>, transform_indices = @transform_3, window_bounds = array<i64: 64, 64>}, {pipeline_mode = #tpu.pipeline_mode<synchronous>, transform_indices = @transform_4, window_bounds = array<i64: 1, 64>}, {pipeline_mode = #tpu.pipeline_mode<synchronous>, transform_indices = @transform_5, window_bounds = array<i64: 64, 64>}, {pipeline_mode = #tpu.pipeline_mode<synchronous>, transform_indices = @transform_6, window_bounds = array<i64: 1, 64>}, {pipeline_mode = #tpu.pipeline_mode<synchronous>, transform_indices = @transform_7, window_bounds = array<i64: 64, 128>}, {pipeline_mode = #tpu.pipeline_mode<synchronous>, transform_indices = @transform_8, window_bounds = array<i64: 1, 128>}, {transform_indices = @transform_9, window_bounds = array<i64: 128, 128>}]} {
    %c0 = arith.constant 0 : index
    %c0_0 = arith.constant 0 : index
    %0 = vector.load %arg1[%c0, %c0_0] : memref<128x784xbf16, #tpu.memory_space<vmem>>, vector<128x784xbf16>
    %c0_1 = arith.constant 0 : index
    %c0_2 = arith.constant 0 : index
    %1 = vector.load %arg2[%c0_1, %c0_2] : memref<784x64xbf16, #tpu.memory_space<vmem>>, vector<784x64xbf16>
    %cst = arith.constant dense<0.000000e+00> : vector<128x64xf32>
    %2 = tpu.matmul %0, %1, %cst {dimension_numbers = #tpu.dot_dimension_numbers<[1], [0], [0], [1], [0, 0, 1, 1], [], []>} : vector<128x784xbf16>, vector<784x64xbf16>, vector<128x64xf32> -> vector<128x64xf32>
    %c0_3 = arith.constant 0 : index
    %c0_4 = arith.constant 0 : index
    %3 = vector.load %arg3[%c0_3, %c0_4] : memref<1x64xf32, #tpu.memory_space<vmem>>, vector<1x64xf32>
    %4 = vector.broadcast %3 : vector<1x64xf32> to vector<128x64xf32>
    %5 = arith.addf %2, %4 : vector<128x64xf32>
    %cst_5 = arith.constant 0.000000e+00 : f32
    %6 = vector.broadcast %cst_5 : f32 to vector<128x64xf32>
    %7 = arith.maximumf %5, %6 : vector<128x64xf32>
    %8 = arith.truncf %7 : vector<128x64xf32> to vector<128x64xbf16>
    %c0_6 = arith.constant 0 : index
    %c0_7 = arith.constant 0 : index
    %9 = vector.load %arg4[%c0_6, %c0_7] : memref<64x64xbf16, #tpu.memory_space<vmem>>, vector<64x64xbf16>
    %cst_8 = arith.constant dense<0.000000e+00> : vector<128x64xf32>
    %10 = tpu.matmul %8, %9, %cst_8 {dimension_numbers = #tpu.dot_dimension_numbers<[1], [0], [0], [1], [0, 0, 1, 1], [], []>} : vector<128x64xbf16>, vector<64x64xbf16>, vector<128x64xf32> -> vector<128x64xf32>
    %c0_9 = arith.constant 0 : index
    %c0_10 = arith.constant 0 : index
    %11 = vector.load %arg5[%c0_9, %c0_10] : memref<1x64xf32, #tpu.memory_space<vmem>>, vector<1x64xf32>
    %12 = vector.broadcast %11 : vector<1x64xf32> to vector<128x64xf32>
    %13 = arith.addf %10, %12 : vector<128x64xf32>
    %cst_11 = arith.constant 0.000000e+00 : f32
    %14 = vector.broadcast %cst_11 : f32 to vector<128x64xf32>
    %15 = arith.maximumf %13, %14 : vector<128x64xf32>
    %16 = arith.truncf %15 : vector<128x64xf32> to vector<128x64xbf16>
    %c0_12 = arith.constant 0 : index
    %c0_13 = arith.constant 0 : index
    %17 = vector.load %arg6[%c0_12, %c0_13] : memref<64x64xbf16, #tpu.memory_space<vmem>>, vector<64x64xbf16>
    %cst_14 = arith.constant dense<0.000000e+00> : vector<128x64xf32>
    %18 = tpu.matmul %16, %17, %cst_14 {dimension_numbers = #tpu.dot_dimension_numbers<[1], [0], [0], [1], [0, 0, 1, 1], [], []>} : vector<128x64xbf16>, vector<64x64xbf16>, vector<128x64xf32> -> vector<128x64xf32>
    %c0_15 = arith.constant 0 : index
    %c0_16 = arith.constant 0 : index
    %19 = vector.load %arg7[%c0_15, %c0_16] : memref<1x64xf32, #tpu.memory_space<vmem>>, vector<1x64xf32>
    %20 = vector.broadcast %19 : vector<1x64xf32> to vector<128x64xf32>
    %21 = arith.addf %18, %20 : vector<128x64xf32>
    %cst_17 = arith.constant 0.000000e+00 : f32
    %22 = vector.broadcast %cst_17 : f32 to vector<128x64xf32>
    %23 = arith.maximumf %21, %22 : vector<128x64xf32>
    %24 = arith.truncf %23 : vector<128x64xf32> to vector<128x64xbf16>
    %c0_18 = arith.constant 0 : index
    %c0_19 = arith.constant 0 : index
    %25 = vector.load %arg8[%c0_18, %c0_19] : memref<64x128xbf16, #tpu.memory_space<vmem>>, vector<64x128xbf16>
    %cst_20 = arith.constant dense<0.000000e+00> : vector<128x128xf32>
    %26 = tpu.matmul %24, %25, %cst_20 {dimension_numbers = #tpu.dot_dimension_numbers<[1], [0], [0], [1], [0, 0, 1, 1], [], []>} : vector<128x64xbf16>, vector<64x128xbf16>, vector<128x128xf32> -> vector<128x128xf32>
    %c0_21 = arith.constant 0 : index
    %c0_22 = arith.constant 0 : index
    %27 = vector.load %arg9[%c0_21, %c0_22] : memref<1x128xf32, #tpu.memory_space<vmem>>, vector<1x128xf32>
    %28 = vector.broadcast %27 : vector<1x128xf32> to vector<128x128xf32>
    %29 = arith.addf %26, %28 : vector<128x128xf32>
    %cst_23 = arith.constant dense<0xFF800000> : vector<128xf32>
    %30 = vector.multi_reduction <maximumf>, %29, %cst_23 [1] : vector<128x128xf32> to vector<128xf32>
    %31 = vector.shape_cast %30 : vector<128xf32> to vector<128x1xf32>
    %32 = vector.broadcast %31 : vector<128x1xf32> to vector<128x128xf32>
    %33 = arith.subf %29, %32 : vector<128x128xf32>
    %34 = math.exp %33 : vector<128x128xf32>
    %cst_24 = arith.constant dense<0.000000e+00> : vector<128xf32>
    %35 = vector.multi_reduction <add>, %34, %cst_24 [1] : vector<128x128xf32> to vector<128xf32>
    %36 = vector.shape_cast %35 : vector<128xf32> to vector<128x1xf32>
    %37 = math.log %36 : vector<128x1xf32>
    %38 = vector.broadcast %37 : vector<128x1xf32> to vector<128x128xf32>
    %39 = arith.subf %33, %38 : vector<128x128xf32>
    %c0_25 = arith.constant 0 : index
    %c0_26 = arith.constant 0 : index
    %40 = vector.load %arg10[%c0_25, %c0_26] : memref<128x128xf32, #tpu.memory_space<vmem>>, vector<128x128xf32>
    tpu.vector_store %arg10[%c0_25, %c0_26], %39 {strides = array<i32>} : memref<128x128xf32, #tpu.memory_space<vmem>>, vector<128x128xf32>,
    return
  }
  func.func @transform_0(%arg0: i32) -> (i32, i32) {
    %c0_i32 = arith.constant 0 : i32
    %c0_i32_0 = arith.constant 0 : i32
    return %arg0, %c0_i32 : i32, i32
  }
  func.func @transform_1(%arg0: i32) -> (i32, i32) {
    %c0_i32 = arith.constant 0 : i32
    %c0_i32_0 = arith.constant 0 : i32
    %c0_i32_1 = arith.constant 0 : i32
    return %c0_i32, %c0_i32_0 : i32, i32
  }
  func.func @transform_2(%arg0: i32) -> (i32, i32) {
    %c0_i32 = arith.constant 0 : i32
    %c0_i32_0 = arith.constant 0 : i32
    %c0_i32_1 = arith.constant 0 : i32
    return %c0_i32, %c0_i32_0 : i32, i32
  }
  func.func @transform_3(%arg0: i32) -> (i32, i32) {
    %c0_i32 = arith.constant 0 : i32
    %c0_i32_0 = arith.constant 0 : i32
    %c0_i32_1 = arith.constant 0 : i32
    return %c0_i32, %c0_i32_0 : i32, i32
  }
  func.func @transform_4(%arg0: i32) -> (i32, i32) {
    %c0_i32 = arith.constant 0 : i32
    %c0_i32_0 = arith.constant 0 : i32
    %c0_i32_1 = arith.constant 0 : i32
    return %c0_i32, %c0_i32_0 : i32, i32
  }
  func.func @transform_5(%arg0: i32) -> (i32, i32) {
    %c0_i32 = arith.constant 0 : i32
    %c0_i32_0 = arith.constant 0 : i32
    %c0_i32_1 = arith.constant 0 : i32
    return %c0_i32, %c0_i32_0 : i32, i32
  }
  func.func @transform_6(%arg0: i32) -> (i32, i32) {
    %c0_i32 = arith.constant 0 : i32
    %c0_i32_0 = arith.constant 0 : i32
    %c0_i32_1 = arith.constant 0 : i32
    return %c0_i32, %c0_i32_0 : i32, i32
  }
  func.func @transform_7(%arg0: i32) -> (i32, i32) {
    %c0_i32 = arith.constant 0 : i32
    %c0_i32_0 = arith.constant 0 : i32
    %c0_i32_1 = arith.constant 0 : i32
    return %c0_i32, %c0_i32_0 : i32, i32
  }
  func.func @transform_8(%arg0: i32) -> (i32, i32) {
    %c0_i32 = arith.constant 0 : i32
    %c0_i32_0 = arith.constant 0 : i32
    %c0_i32_1 = arith.constant 0 : i32
    return %c0_i32, %c0_i32_0 : i32, i32
  }
  func.func @transform_9(%arg0: i32) -> (i32, i32) {
    %c0_i32 = arith.constant 0 : i32
    %c0_i32_0 = arith.constant 0 : i32
    return %arg0, %c0_i32 : i32, i32
  }
}

</mosaic_0001>

<bundles_post_ra>
// kernel: tpu_custom_call.1
= control target key start
LH: loop header
LB: loop body
LE: loop exit
PB: predicated region body
PF: predicated region fallthrough
CT: control target
= control target key end

     0   :  { %14 = vsyncpa [#allocation3], 0  ;;  %s3797_s0 = inlined_call_operand.vmem [shape: bf16[384,784], index: 0, kind: input, shape index: {}]   ;;  %s3798_s1 = inlined_call_operand.vmem [shape: bf16[784,64], index: 1, kind: input, shape index: {}]   ;;  %s3799_s2 = inlined_call_operand.vmem [shape: f32[1,64], index: 2, kind: input, shape index: {}]   ;;  %s3800_s3 = inlined_call_operand.vmem [shape: bf16[64,64], index: 3, kind: input, shape index: {}]   ;;  %s3801_s4 = inlined_call_operand.vmem [shape: f32[1,64], index: 4, kind: input, shape index: {}]   ;;  %s3802_s5 = inlined_call_operand.vmem [shape: bf16[64,64], index: 5, kind: input, shape index: {}]   ;;  %s3803_s6 = inlined_call_operand.vmem [shape: f32[1,64], index: 6, kind: input, shape index: {}]   ;;  %s3804_s7 = inlined_call_operand.vmem [shape: bf16[64,128], index: 7, kind: input, shape index: {}]   ;;  %s3805_s8 = inlined_call_operand.vmem [shape: f32[1,128], index: 8, kind: input, shape index: {}]   ;;  %s3806_s9 = inlined_call_operand.hbm [shape: f32[384,128], index: 9, kind: output, shape index: {}]  }
   0x1   :  { %16 = vsyncpa [#allocation3 + $0x1], 0  ;;  %s3154_s30 = smov 0   ;;  %s3156_s10 = smov 0  }
   0x2   :  { %s3158_s11 = smov 0   ;;  %s3160_s12 = smov 0  }
   0x3 LB: > { %s3175_s13 = sadd.s32 4294967295, %s3099_s12   ;;  %s2299_s14 = sadd.s32 4294967294, %s3099_s12   ;;  %s3099_s12 = sphi %s3160_s12, %s3812_s12   ;;  %s3095_s11 = sphi %s3158_s11, %s3811_s11   ;;  %s3091_s10 = sphi %s3156_s10, %s3810_s10   ;;  %s3087_s30 = sphi %s3154_s30, %s3809_s30  }
   0x4   : > { %s3179_s15 = sadd.s32 1, %s3099_s12   ;;  %s223_s16 = sadd.s32 1, %s3095_s11 }
   0x5   : > { %s220_s17 = ssub.s32 %s3099_s12, %s3179_s15  ;;  %p233_p0 = scmp.ne.s32.totalorder %s3095_s11, %s3091_s10 }
   0x6   : > { %p221_p1 = scmp.eq.s32.totalorder %s220_s17, 0  ;;  %p234_p2 = scmp.eq.s32.totalorder %s3175_s13, 2 }
   0x7   : > { %p239_p3 = scmp.ne.s32.totalorder %s3091_s10, %s3087_s30  ;;  %p240_p4 = scmp.eq.s32.totalorder %s2299_s14, 2 }
   0x8   : > { %s3190_s18 = scalar_select %p221_p1, %s3095_s11, %s223_s16  }
   0x9   : > { %p3192_p5 = por %p234_p2, %p233_p0  ;;  %p3196_p6 = por %p240_p4, %p239_p3 }
   0xa   : > { %p2302_p7 = scmp.ge.s32.totalorder %s3099_s12, 1  ;;  %p292_p8 = scmp.lt.s32.totalorder %s3099_s12, 4 }
   0xc   : > { %p293_p9 = pnand %p2302_p7, %p292_p8 }
   0xd   : > { %s2304_s25 = sshll.u32 (!%p293_p9), %s3175_s13, 4  ;;  %s326_s14 = sand.u32 (!%p293_p9), 1, %s3091_s10  }
   0xe   : > { %296 = sbr.rel (%p293_p9) target bundleno = 1324 (0x52c), region = 56  ;;  %p330_p10 = scmp.lt.s32.totalorder (!%p293_p9), %s2304_s25, 47 }
   0xf   : > { %s2464_s17 = sshll.u32 (!%p293_p9), %s3175_s13, 11  ;;  %s3757_s13 = scalar_lea.sflag (!%p293_p9), [#allocation3], %s326_s14 }
  0x10   : > { %s3749_s23 = scalar_lea.hbm (!%p293_p9), %s3806_s9, %s2464_s17  ;;  %s3101_s28 = smov (!%p293_p9), [#allocation2]  }
  0x13   : > { %v2834_v0 = vld [vmem:[%s3798_s1 + $0x78] sm:$0xff]   ;;  %v2838_v4 = vld [vmem:[%s3798_s1 + $0x70] sm:$0xff]   ;;  %v2842_v8 = vld [vmem:[%s3798_s1 + $0x68] sm:$0xff]   ;;  %s3814_s25 = smov (!%p330_p10, %s2304_s25), 47  ;;  %vm1081_vm0 = vcmask 130048   ;;  %vm1557_vm1 = vcmask 523264  }
  0x14   : > { %v2835_v1 = vld [vmem:[%s3798_s1 + $0x38] sm:$0xff]   ;;  %2465 = vmatprep.subr.bf16.mxu0 %v2834_v0  ;;  %v2839_v5 = vld [vmem:[%s3798_s1 + $0x30] sm:$0xff]   ;;  %v2843_v9 = vld [vmem:[%s3798_s1 + $0x28] sm:$0xff]   ;;  %s2792_s26 = smul.u32 28, %s3814_s25 }
  0x15   : > { %v2836_v2 = vld [vmem:[%s3798_s1 + $0xf8] sm:$0xff]   ;;  %2466 = vmatpush3.bf16.msra.mxu0 %v2835_v1  ;;  %v2840_v6 = vld [vmem:[%s3798_s1 + $0xf0] sm:$0xff]   ;;  %v2844_v10 = vld [vmem:[%s3798_s1 + $0xe8] sm:$0xff]  }
  0x16   : > { %v2837_v3 = vld [vmem:[%s3798_s1 + $0xb8] sm:$0xff]   ;;  %2529 = vmatprep.subr.bf16.mxu1 %v2836_v2  ;;  %2467 = vmatprep.subr.bf16.mxu0 %v2838_v4  ;;  %v2841_v7 = vld [vmem:[%s3798_s1 + $0xb0] sm:$0xff]   ;;  %v2845_v11 = vld [vmem:[%s3798_s1 + $0xa8] sm:$0xff]   ;;  %s3293_s24 = scalar_lea.vmem %s3797_s0, %s2792_s26  ;;  %s2303_s26 = sshll.u32 %s326_s14, 7 }
  0x17   : > { %2530 = vmatpush3.bf16.msra.mxu1 %v2837_v3  ;;  %v2846_v12 = vld [vmem:[%s3798_s1 + $0x60] sm:$0xff]   ;;  %v2850_v16 = vld [vmem:[%s3798_s1 + $0x58] sm:$0xff]   ;;  %v2854_v20 = vld [vmem:[%s3798_s1 + $0x50] sm:$0xff]   ;;  %s3713_s16 = scalar_lea.vmem [#allocation2], %s2303_s26 }
  0x18   : > { %2531 = vmatprep.subr.bf16.mxu1 %v2840_v6  ;;  %v2847_v13 = vld [vmem:[%s3798_s1 + $0x20] sm:$0xff]   ;;  %v2851_v17 = vld [vmem:[%s3798_s1 + $0x18] sm:$0xff]   ;;  %v2855_v21 = vld [vmem:[%s3798_s1 + $0x10] sm:$0xff]   ;;  %s2237_s21 = sshll.u32 %s3713_s16, 4  ;;  %s3751_s21 = int_to_ptr.vmem [resolvable:$true] %s2237_s21 }
  0x19   : > { %2468 = vmatpush3.bf16.msra.mxu0 %v2839_v5  ;;  %v2848_v14 = vld [vmem:[%s3798_s1 + $0xe0] sm:$0xff]   ;;  %v2852_v18 = vld [vmem:[%s3798_s1 + $0xd8] sm:$0xff]   ;;  %v2856_v22 = vld [vmem:[%s3798_s1 + $0xd0] sm:$0xff]   ;;  %s3039_s27 = scalar_lea.vmem %s3751_s21, 2048 }
  0x1a   : > { %2469 = vmatprep.subr.bf16.mxu0 %v2842_v8  ;;  %v2849_v15 = vld [vmem:[%s3798_s1 + $0xa0] sm:$0xff]   ;;  %v2853_v19 = vld [vmem:[%s3798_s1 + $0x98] sm:$0xff]   ;;  %v2857_v23 = vld [vmem:[%s3798_s1 + $0x90] sm:$0xff]   ;;  %p3040_p11 = scmp.ne.s32.totalorder %s3751_s21, %s3039_s27 }
  0x1b   : > { %2532 = vmatpush3.bf16.msra.mxu1 %v2841_v7  ;;  %v2858_v24 = vld [vmem:[%s3798_s1 + $0x48] sm:$0xff]   ;;  %v2862_v28 = vld [vmem:[%s3798_s1 + $0x40] sm:$0xff]   ;;  %v2869_v34 = vld [vmem:[%s3798_s1 + $0x178] sm:$0xff]  }
  0x1c   : > { %2533 = vmatprep.subr.bf16.mxu1 %v2844_v10  ;;  %v2859_v25 = vld [vmem:[%s3798_s1 + $0x8] sm:$0xff]   ;;  %v2863_v29 = vld [vmem:[%s3798_s1] sm:$0xff]   ;;  %v2873_v37 = vld [vmem:[%s3798_s1 + $0x138] sm:$0xff]   ;;  %p3041_p12 = pnand %p3040_p11, %p3192_p5 }
  0x1d   : > { %2470 = vmatpush3.bf16.msra.mxu0 %v2843_v9  ;;  %v2860_v26 = vld [vmem:[%s3798_s1 + $0xc8] sm:$0xff]   ;;  %v2864_v30 = vld [vmem:[%s3798_s1 + $0xc0] sm:$0xff]   ;;  %v2874_v38 = vld [vmem:[%s3293_s24 + $0x3c] ss:$28 sps:$4 sm:$0xff]  }
  0x1e   : > { %2471 = vmatprep.subr.bf16.mxu0 %v2846_v12  ;;  %v2861_v27 = vld [vmem:[%s3798_s1 + $0x88] sm:$0xff]   ;;  %v2865_v31 = vld [vmem:[%s3293_s24] ss:$28 sps:$4 sm:$0xff]   ;;  %v2876_v39 = vld [vmem:[%s3293_s24 + $0x38] ss:$28 sps:$4 sm:$0xff]   ;;  %p3042_p13 = pneg %p3041_p12 }
  0x1f   : > { %2534 = vmatpush3.bf16.msra.mxu1 %v2845_v11  ;;  %v2867_v32 = vld [vmem:[%s3293_s24 + $0x4] ss:$28 sps:$4 sm:$0xff]   ;;  %v2872_v36 = vld [vmem:[%s3293_s24 + $0xc] ss:$28 sps:$4 sm:$0xff]   ;;  %v2877_v40 = vld [vmem:[%s3798_s1 + $0x170] sm:$0xff]  }
  0x20   : > { %2535 = vmatprep.subr.bf16.mxu1 %v2848_v14  ;;  %v2868_v33 = vld [vmem:[%s3798_s1 + $0x80] sm:$0xff]   ;;  %1138 = vmatprep.mubr.bf16.mxu0 %v2867_v32  ;;  %v2880_v42 = vld [vmem:[%s3798_s1 + $0x130] sm:$0xff]   ;;  %v2885_v45 = vld [vmem:[%s3798_s1 + $0x168] sm:$0xff]  }
  0x21   : > { %2472 = vmatpush3.bf16.msra.mxu0 %v2847_v13  ;;  %v2870_v35 = vld [vmem:[%s3293_s24 + $0x8] ss:$28 sps:$4 sm:$0xff]   ;;  %1235 = vmatprep.mubr.bf16.mxu1 %v2872_v36  ;;  %v2881_v43 = vld [vmem:[%s3293_s24 + $0x40] ss:$28 sps:$4 sm:$0xff]   ;;  %v2882_v44 = vld [vmem:[%s3293_s24 + $0x74] ss:$28 sps:$4 sm:$0xff]  }
  0x22   : > { %2473 = vmatprep.subr.bf16.mxu0 %v2850_v16  ;;  %v2878_v41 = vld [vmem:[%s3293_s24 + $0x44] ss:$28 sps:$4 sm:$0xff]   ;;  %v2886_v46 = vld [vmem:[%s3293_s24 + $0x7c] ss:$28 sps:$4 sm:$0xff]   ;;  %v2888_v47 = vld [vmem:[%s3798_s1 + $0x128] sm:$0xff]  }
  0x23   : > { %2536 = vmatpush3.bf16.msra.mxu1 %v2849_v15  ;;  %v2884_v48 = vld [vmem:[%s3293_s24 + $0x70] ss:$28 sps:$4 sm:$0xff]   ;;  %v2893_v50 = vld [vmem:[%s3798_s1 + $0x160] sm:$0xff]   ;;  %v2889_v51 = vld [vmem:[%s3293_s24 + $0x78] ss:$28 sps:$4 sm:$0xff]  }
  0x24   : > { %2537 = vmatprep.subr.bf16.mxu1 %v2852_v18  ;;  %v2890_v49 = vld [vmem:[%s3293_s24 + $0xac] ss:$28 sps:$4 sm:$0xff]   ;;  %v2896_v52 = vld [vmem:[%s3798_s1 + $0x120] sm:$0xff]   ;;  %v2894_v53 = vld [vmem:[%s3293_s24 + $0xb4] ss:$28 sps:$4 sm:$0xff]  }
  0x25   : > { %2474 = vmatpush3.bf16.msra.mxu0 %v2851_v17  ;;  %v2901_v54 = vld [vmem:[%s3798_s1 + $0x158] sm:$0xff]   ;;  %v2892_v55 = vld [vmem:[%s3293_s24 + $0xa8] ss:$28 sps:$4 sm:$0xff]   ;;  %v2897_v59 = vld [vmem:[%s3293_s24 + $0xb0] ss:$28 sps:$4 sm:$0xff]  }
  0x26   : > { %2475 = vmatprep.subr.bf16.mxu0 %v2854_v20  ;;  %v2904_v56 = vld [vmem:[%s3798_s1 + $0x118] sm:$0xff]   ;;  %v2898_v57 = vld [vmem:[%s3293_s24 + $0xe4] ss:$28 sps:$4 sm:$0xff]   ;;  %v2910_v60 = vld [vmem:[%s3798_s1 + $0x150] sm:$0xff]  }
  0x27   : > { %2538 = vmatpush3.bf16.msra.mxu1 %v2853_v19  ;;  %v2906_v58 = vld [vmem:[%s3798_s1 + $0x180] sm:$0xff]   ;;  %v2902_v61 = vld [vmem:[%s3293_s24 + $0xec] ss:$28 sps:$4 sm:$0xff]   ;;  %v2913_v62 = vld [vmem:[%s3798_s1 + $0x110] sm:$0xff]  }
  0x28   : > { %2539 = vmatprep.subr.bf16.mxu1 %v2856_v22  ;;  %v2900_v63 = vld [vmem:[%s3293_s24 + $0xe0] ss:$28 sps:$4 sm:$0xff]   ;;  %v2918_v0 = vld [vmem:[%s3798_s1 + $0x148] sm:$0xff]   ;;  %v2909_v7 = vld [vmem:[%s3293_s24 + $0x118] ss:$28 sps:$4 sm:$0xff]  }
  0x29   : > { %2476 = vmatpush3.bf16.msra.mxu0 %v2855_v21  ;;  %v2907_v1 = vld [vmem:[%s3293_s24 + $0x11c] ss:$28 sps:$4 sm:$0xff]   ;;  %v2921_v2 = vld [vmem:[%s3798_s1 + $0x108] sm:$0xff]   ;;  %v2911_v4 = vld [vmem:[%s3293_s24 + $0x124] ss:$28 sps:$4 sm:$0xff]  }
  0x2a   : > { %2477 = vmatprep.subr.bf16.mxu0 %v2858_v24  ;;  %v2905_v3 = vld [vmem:[%s3293_s24 + $0xe8] ss:$28 sps:$4 sm:$0xff]   ;;  %v2915_v8 = vld [vmem:[%s3293_s24 + $0x154] ss:$28 sps:$4 sm:$0xff]   ;;  %v2914_v9 = vld [vmem:[%s3293_s24 + $0x120] ss:$28 sps:$4 sm:$0xff]  }
  0x2b   : > { %2540 = vmatpush3.bf16.msra.mxu1 %v2857_v23  ;;  %v2926_v5 = vld [vmem:[%s3798_s1 + $0x140] sm:$0xff]   ;;  %v2919_v10 = vld [vmem:[%s3293_s24 + $0x15c] ss:$28 sps:$4 sm:$0xff]   ;;  %v2917_v11 = vld [vmem:[%s3293_s24 + $0x150] ss:$28 sps:$4 sm:$0xff]  }
  0x2c   : > { %2541 = vmatprep.subr.bf16.mxu1 %v2860_v26  ;;  %v2929_v6 = vld [vmem:[%s3798_s1 + $0x100] sm:$0xff]   ;;  %v2923_v12 = vld [vmem:[%s3293_s24 + $0x18c] ss:$28 sps:$4 sm:$0xff]   ;;  %v2922_v13 = vld [vmem:[%s3293_s24 + $0x158] ss:$28 sps:$4 sm:$0xff]  }
  0x2d   : > { %2478 = vmatpush3.bf16.msra.mxu0 %v2859_v25  ;;  %v2927_v14 = vld [vmem:[%s3293_s24 + $0x194] ss:$28 sps:$4 sm:$0xff]   ;;  %v2925_v15 = vld [vmem:[%s3293_s24 + $0x188] ss:$28 sps:$4 sm:$0xff]   ;;  %v2943_v25 = vld [vmem:[%s3293_s24 + $0xc0] ss:$28 sps:$4 sm:$0xff]  }
  0x2e   : > { %2479 = vmatprep.subr.bf16.mxu0 %v2862_v28  ;;  %v2930_v16 = vld [vmem:[%s3293_s24 + $0x190] ss:$28 sps:$4 sm:$0xff]   ;;  %v2934_v18 = vld [vmem:[%s3293_s24 + $0x18] ss:$28 sps:$4 sm:$0xff]   ;;  %v2942_v22 = vld [vmem:[%s3293_s24 + $0x88] ss:$28 sps:$4 sm:$0xff]  }
  0x2f   : > { %2542 = vmatpush3.bf16.msra.mxu1 %v2861_v27  ;;  %v2933_v17 = vld [vmem:[%s3293_s24 + $0x14] ss:$28 sps:$4 sm:$0xff]   ;;  %v2936_v20 = vld [vmem:[%s3293_s24 + $0x4c] ss:$28 sps:$4 sm:$0xff]   ;;  %v2939_v24 = vld [vmem:[%s3293_s24 + $0x84] ss:$28 sps:$4 sm:$0xff]  }
  0x30   : > { %2543 = vmatprep.subr.bf16.mxu1 %v2864_v30  ;;  %v2931_v19 = vld [vmem:[%s3293_s24 + $0x10] ss:$28 sps:$4 sm:$0xff]   ;;  %v2938_v23 = vld [vmem:[%s3293_s24 + $0x48] ss:$28 sps:$4 sm:$0xff]   ;;  %v2950_v26 = vld [vmem:[%s3293_s24 + $0xf8] ss:$28 sps:$4 sm:$0xff]  }
  0x31   : > { %2480 = vmatpush3.bf16.msra.mxu0 %v2863_v29  ;;  %v2935_v21 = vld [vmem:[%s3293_s24 + $0x50] ss:$28 sps:$4 sm:$0xff]   ;;  %v2941_v27 = vld [vmem:[%s3293_s24 + $0x80] ss:$28 sps:$4 sm:$0xff]   ;;  %v2958_v30 = vld [vmem:[%s3293_s24 + $0x168] ss:$28 sps:$4 sm:$0xff]  }
  0x32   : > { %2593 = vmatprep.subr.bf16.mxu0 %v2869_v34  ;;  %v2944_v28 = vld [vmem:[%s3293_s24 + $0xbc] ss:$28 sps:$4 sm:$0xff]   ;;  %v2951_v29 = vld [vmem:[%s3293_s24 + $0x130] ss:$28 sps:$4 sm:$0xff]   ;;  %v2954_v36 = vld [vmem:[%s3293_s24 + $0x128] ss:$28 sps:$4 sm:$0xff]  }
  0x33   : > { %2544 = vmatpush3.bf16.msra.mxu1 %v2868_v33  ;;  %v2947_v32 = vld [vmem:[%s3293_s24 + $0xf4] ss:$28 sps:$4 sm:$0xff]   ;;  %v2959_v33 = vld [vmem:[%s3293_s24 + $0x1a0] ss:$28 sps:$4 sm:$0xff]  }
  0x34   : > { %1139 = vmatmul.mubr.bf16.vlgmr.msra.gmra.mxu0 %v2865_v31  ;;  %2702 = vmatprep.subr.bf16.mxu1 %v2906_v58  ;;  %v2946_v31 = vld [vmem:[%s3293_s24 + $0xb8] ss:$28 sps:$4 sm:$0xff]   ;;  %v2949_v34 = vld [vmem:[%s3293_s24 + $0xf0] ss:$28 sps:$4 sm:$0xff]  }
  0x35   : > { %2594 = vmatpush3.bf16.msra.mxu0 %v2873_v37  ;;  %1146 = vmatprep.mubr.bf16.mxu0 %v2874_v38  ;;  %v2955_v37 = vld [vmem:[%s3293_s24 + $0x164] ss:$28 sps:$4 sm:$0xff]  }
  0x36   : > { %1236 = vmatmul.mubr.bf16.vlgmr.msra.gmra.mxu1 %v2870_v35  ;;  %2595 = vmatprep.subr.bf16.mxu0 %v2877_v40  ;;  %v2952_v35 = vld [vmem:[%s3293_s24 + $0x12c] ss:$28 sps:$4 sm:$0xff]   ;;  %v2957_v38 = vld [vmem:[%s3293_s24 + $0x160] ss:$28 sps:$4 sm:$0xff]   ;;  %v2962_v40 = vld [vmem:[%s3293_s24 + $0x198] ss:$28 sps:$4 sm:$0xff]  }
  0x37   : > { %1243 = vmatprep.mubr.bf16.mxu1 %v2878_v41  ;;  %2703 = vmatpush3.bf16.msra.mxu1 %v2906_v58  ;;  %v2963_v41 = vld [vmem:[%s3800_s3 + $0x18] sm:$0xff]  }
  0x38   : > { %2720 = vmatprep.subr.bf16.mxu1 %v2963_v41 }
  0x39   : > { %2596 = vmatpush3.bf16.msra.mxu0 %v2880_v42  ;;  %v2964_v42 = vld [vmem:[%s3800_s3 + $0x10] sm:$0xff]  }
  0x3a   : > { %2597 = vmatprep.subr.bf16.mxu0 %v2885_v45 }
  0x3c   : > { %1147 = vmatmul.mubr.bf16.gmra.mxu0 %v2876_v39  ;;  %v2960_v39 = vld [vmem:[%s3293_s24 + $0x19c] ss:$28 sps:$4 sm:$0xff]   ;;  %s3043_s24 = sshll.u32 %s3101_s28, 4  ;;  %s3044_s24 = int_to_ptr.vmem [resolvable:$false] %s3043_s24 }
  0x3d   : > { %1154 = vmatprep.mubr.bf16.mxu0 %v2882_v44  ;;  %2598 = vmatpush3.bf16.msra.mxu0 %v2888_v47  ;;  %v2966_v44 = vld [vmem:[%s3800_s3] sm:$0xff]   ;;  %s3045_s29 = scalar_lea.vmem %s3044_s24, 4096  ;;  %p3046_p0 = scmp.lt.s32.totalorder %s3751_s21, %s3044_s24 }
  0x3e   : > { %1244 = vmatmul.mubr.bf16.gmra.mxu1 %v2881_v43  ;;  %2599 = vmatprep.subr.bf16.mxu0 %v2893_v50  ;;  %v2965_v43 = vld [vmem:[%s3800_s3 + $0x8] sm:$0xff]   ;;  %p3047_p1 = scmp.lt.s32.totalorder %s3045_s29, %s3039_s27 }
  0x3f   : > { %1251 = vmatprep.mubr.bf16.mxu1 %v2886_v46  ;;  %v3434_v46 = vld [vmem:[%s3799_s2] ss:$0 sm:$0xff] }
  0x40   : > { %p3048_p2 = por %p3047_p1, %p3046_p0 }
  0x41   : > { %2600 = vmatpush3.bf16.msra.mxu0 %v2896_v52 }
  0x42   : > { %2601 = vmatprep.subr.bf16.mxu0 %v2901_v54  ;;  %p3049_p3 = pnand %p3048_p2, %p3042_p13 }
  0x44   : > { %1155 = vmatmul.mubr.bf16.gmra.mxu0 %v2884_v48 }
  0x45   : > { %1162 = vmatprep.mubr.bf16.mxu0 %v2890_v49  ;;  %2602 = vmatpush3.bf16.msra.mxu0 %v2904_v56 }
  0x46   : > { %1252 = vmatmul.mubr.bf16.gmra.mxu1 %v2889_v51  ;;  %2603 = vmatprep.subr.bf16.mxu0 %v2910_v60  ;;  %v2968_v60 = vld [vmem:[%s3802_s5 + $0x10] sm:$0xff]  }
  0x47   : > { %1259 = vmatprep.mubr.bf16.mxu1 %v2894_v53 }
  0x49   : > { %2604 = vmatpush3.bf16.msra.mxu0 %v2913_v62 }
  0x4a   : > { %2605 = vmatprep.subr.bf16.mxu0 %v2918_v0 }
  0x4c   : > { %1163 = vmatmul.mubr.bf16.gmra.mxu0 %v2892_v55 }
  0x4d   : > { %1170 = vmatprep.mubr.bf16.mxu0 %v2898_v57  ;;  %2606 = vmatpush3.bf16.msra.mxu0 %v2921_v2 }
  0x4e   : > { %1260 = vmatmul.mubr.bf16.gmra.mxu1 %v2897_v59  ;;  %2607 = vmatprep.subr.bf16.mxu0 %v2926_v5  ;;  %v2967_v59 = vld [vmem:[%s3802_s5 + $0x18] sm:$0xff]  }
  0x4f   : > { %1267 = vmatprep.mubr.bf16.mxu1 %v2902_v61 }
  0x51   : > { %2608 = vmatpush3.bf16.msra.mxu0 %v2929_v6 }
  0x52   : > { %2744 = vmatprep.subr.bf16.mxu0 %v2967_v59 }
  0x54   : > { %1171 = vmatmul.mubr.bf16.gmra.mxu0 %v2900_v63 }
  0x55   : > { %1178 = vmatprep.mubr.bf16.mxu0 %v2907_v1 }
  0x56   : > { %1268 = vmatmul.mubr.bf16.gmra.mxu1 %v2905_v3 }
  0x57   : > { %1275 = vmatprep.mubr.bf16.mxu1 %v2911_v4 }
  0x5c   : > { %1179 = vmatmul.mubr.bf16.gmra.mxu0 %v2909_v7 }
  0x5d   : > { %1186 = vmatprep.mubr.bf16.mxu0 %v2915_v8 }
  0x5e   : > { %1276 = vmatmul.mubr.bf16.gmra.mxu1 %v2914_v9 }
  0x5f   : > { %1283 = vmatprep.mubr.bf16.mxu1 %v2919_v10 }
  0x64   : > { %1187 = vmatmul.mubr.bf16.gmra.mxu0 %v2917_v11 }
  0x65   : > { %1194 = vmatprep.mubr.bf16.mxu0 %v2923_v12 }
  0x66   : > { %1284 = vmatmul.mubr.bf16.gmra.mxu1 %v2922_v13 }
  0x67   : > { %1291 = vmatprep.mubr.bf16.mxu1 %v2927_v14 }
  0x6c   : > { %1195 = vmatmul.mubr.bf16.gmra.mxu0 %v2925_v15 }
  0x6d   : > { %1332 = vmatprep.mubr.bf16.mxu0 %v2933_v17 }
  0x6e   : > { %1292 = vmatmul.mubr.bf16.gmra.mxu1 %v2930_v16 }
  0x6f   : > { %2704 = vmatprep.mubr.msk.bf16.mxu1 %vm1081_vm0, %v2934_v18 }
  0x74   : > { %1333 = vmatmul.mubr.bf16.vlgmr.msra.gmra.mxu0 %v2931_v19 }
  0x75   : > { %1340 = vmatprep.mubr.bf16.mxu0 %v2936_v20  ;;  %2745 = vmatpush3.bf16.msra.mxu0 %v2967_v59 }
  0x76   : > { %2705 = vmatmul.mubr.msk.bf16.vlgmr.msra.gmra.mxu1 %vm1081_vm0, %v2935_v21  ;;  %2746 = vmatprep.subr.bf16.mxu0 %v2968_v60 }
  0x77   : > { %2708 = vmatprep.mubr.msk.bf16.mxu1 %vm1081_vm0, %v2942_v22  ;;  %2721 = vmatpush3.bf16.msra.mxu1 %v2963_v41 }
  0x78   : > { %2722 = vmatprep.subr.bf16.mxu1 %v2964_v42 }
  0x79   : > { %2747 = vmatpush3.bf16.msra.mxu0 %v2968_v60 }
  0x7b   : > { %2723 = vmatpush3.bf16.msra.mxu1 %v2964_v42 }
  0x7c   : > { %1341 = vmatmul.mubr.bf16.gmra.mxu0 %v2938_v23  ;;  %2724 = vmatprep.subr.bf16.mxu1 %v2965_v43 }
  0x7d   : > { %1348 = vmatprep.mubr.bf16.mxu0 %v2939_v24 }
  0x7e   : > { %2709 = vmatmul.mubr.msk.bf16.gmra.mxu1 %vm1081_vm0, %v2943_v25 }
  0x7f   : > { %2712 = vmatprep.mubr.msk.bf16.mxu1 %vm1081_vm0, %v2950_v26  ;;  %2725 = vmatpush3.bf16.msra.mxu1 %v2965_v43 }
  0x80   : > { %2726 = vmatprep.subr.bf16.mxu1 %v2966_v44 }
  0x83   : > { %2727 = vmatpush3.bf16.msra.mxu1 %v2966_v44 }
  0x84   : > { %1349 = vmatmul.mubr.bf16.gmra.mxu0 %v2941_v27 }
  0x85   : > { %1356 = vmatprep.mubr.bf16.mxu0 %v2944_v28 }
  0x86   : > { %2713 = vmatmul.mubr.msk.bf16.gmra.mxu1 %vm1081_vm0, %v2951_v29 }
  0x87   : > { %2716 = vmatprep.mubr.msk.bf16.mxu1 %vm1081_vm0, %v2958_v30 }
  0x8c   : > { %1357 = vmatmul.mubr.bf16.gmra.mxu0 %v2946_v31 }
  0x8d   : > { %1364 = vmatprep.mubr.bf16.mxu0 %v2947_v32 }
  0x8e   : > { %2717 = vmatmul.mubr.msk.bf16.gmra.mxu1 %vm1081_vm0, %v2959_v33 }
  0x94   : > { %1365 = vmatmul.mubr.bf16.gmra.mxu0 %v2949_v34 }
  0x95   : > { %1372 = vmatprep.mubr.bf16.mxu0 %v2952_v35 }
  0x9c   : > { %1373 = vmatmul.mubr.bf16.gmra.mxu0 %v2954_v36 }
  0x9d   : > { %1380 = vmatprep.mubr.bf16.mxu0 %v2955_v37 }
  0xa4   : > { %1381 = vmatmul.mubr.bf16.gmra.mxu0 %v2957_v38 }
  0xa5   : > { %1388 = vmatprep.mubr.bf16.mxu0 %v2960_v39 }
  0xac   : > { %1389 = vmatmul.mubr.bf16.gmra.mxu0 %v2962_v40 }
  0xf4   : > { %v2481_v45 = vpop.f32.mrf.mxu0 }
  0xf6   : > { %v2482_v47 = vpop.f32.mrf.mxu0  ;;  %v2545_v49 = vpop.f32.mrf.mxu1 }
  0xf7   : > { %v2483_v48 = vadd.f32 %v2482_v47, %v2481_v45 }
  0xf8   : > { %v3436_v50 = vpop.f32.mrf.mxu0  ;;  %v2546_v52 = vpop.f32.mrf.mxu1 }
  0xf9   : > { %v1141_v51 = vadd.f32 %v2483_v48, %v3434_v46  ;;  %v2547_v53 = vadd.f32 %v2546_v52, %v2545_v49 }
  0xfa   : > { %v3439_v54 = vpop.f32.mrf.mxu0  ;;  %v3441_v55 = vpop.f32.mrf.mxu1 }
  0xfb   : > { %v3443_v56 = vadd.f32 %v2547_v53, %v1141_v51 }
  0xfc   : > { %v2487_v57 = vpop.f32.mrf.mxu0  ;;  %v3445_v58 = vpop.f32.mrf.mxu1 }
  0xfe   : > { %v2488_v61 = vpop.f32.mrf.mxu0  ;;  %v2551_v63 = vpop.f32.mrf.mxu1 }
  0xff   : > { %v2489_v62 = vadd.f32 %v2488_v61, %v2487_v57 }
 0x100   : > { %v3453_v0 = vpop.f32.mrf.mxu0  ;;  %v2552_v2 = vpop.f32.mrf.mxu1 }
 0x101   : > { %v1149_v1 = vadd.f32 %v2489_v62, %v3434_v46  ;;  %v2553_v3 = vadd.f32 %v2552_v2, %v2551_v63 }
 0x102   : > { %v3456_v4 = vpop.f32.mrf.mxu0  ;;  %v3458_v5 = vpop.f32.mrf.mxu1 }
 0x103   : > { %v3460_v6 = vadd.f32 %v2553_v3, %v1149_v1 }
 0x104   : > { %v2493_v7 = vpop.f32.mrf.mxu0  ;;  %v3462_v8 = vpop.f32.mrf.mxu1 }
 0x106   : > { %v2494_v9 = vpop.f32.mrf.mxu0  ;;  %v2557_v11 = vpop.f32.mrf.mxu1 }
 0x107   : > { %v2495_v10 = vadd.f32 %v2494_v9, %v2493_v7 }
 0x108   : > { %v3464_v12 = vpop.f32.mrf.mxu0  ;;  %v2558_v14 = vpop.f32.mrf.mxu1 }
 0x109   : > { %v1157_v13 = vadd.f32 %v2495_v10, %v3434_v46  ;;  %v2559_v15 = vadd.f32 %v2558_v14, %v2557_v11 }
 0x10a   : > { %v3467_v16 = vpop.f32.mrf.mxu0  ;;  %v3469_v17 = vpop.f32.mrf.mxu1 }
 0x10b   : > { %v3471_v18 = vadd.f32 %v2559_v15, %v1157_v13 }
 0x10c   : > { %v2499_v19 = vpop.f32.mrf.mxu0  ;;  %v3473_v20 = vpop.f32.mrf.mxu1 }
 0x10e   : > { %v2500_v21 = vpop.f32.mrf.mxu0  ;;  %v2563_v23 = vpop.f32.mrf.mxu1 }
 0x10f   : > { %v2501_v22 = vadd.f32 %v2500_v21, %v2499_v19 }
 0x110   : > { %v3475_v24 = vpop.f32.mrf.mxu0  ;;  %v2564_v26 = vpop.f32.mrf.mxu1 }
 0x111   : > { %v1165_v25 = vadd.f32 %v2501_v22, %v3434_v46  ;;  %v2565_v27 = vadd.f32 %v2564_v26, %v2563_v23 }
 0x112   : > { %v3478_v28 = vpop.f32.mrf.mxu0  ;;  %v3480_v29 = vpop.f32.mrf.mxu1 }
 0x113   : > { %v3482_v30 = vadd.f32 %v2565_v27, %v1165_v25 }
 0x114   : > { %v2505_v31 = vpop.f32.mrf.mxu0  ;;  %v3484_v32 = vpop.f32.mrf.mxu1 }
 0x116   : > { %v2506_v33 = vpop.f32.mrf.mxu0  ;;  %v2569_v35 = vpop.f32.mrf.mxu1 }
 0x117   : > { %v2507_v34 = vadd.f32 %v2506_v33, %v2505_v31 }
 0x118   : > { %v3486_v36 = vpop.f32.mrf.mxu0  ;;  %v2570_v38 = vpop.f32.mrf.mxu1 }
 0x119   : > { %v1173_v37 = vadd.f32 %v2507_v34, %v3434_v46  ;;  %v2571_v39 = vadd.f32 %v2570_v38, %v2569_v35  ;;  %v2486_v34 = vadd.f32 %v3439_v54, %v3436_v50 }
 0x11a   : > { %v3489_v40 = vpop.f32.mrf.mxu0  ;;  %v3491_v41 = vpop.f32.mrf.mxu1 }
 0x11b   : > { %v3493_v42 = vadd.f32 %v2571_v39, %v1173_v37 }
 0x11c   : > { %v2511_v43 = vpop.f32.mrf.mxu0  ;;  %v3495_v44 = vpop.f32.mrf.mxu1 }
 0x11e   : > { %v2512_v45 = vpop.f32.mrf.mxu0  ;;  %v2575_v48 = vpop.f32.mrf.mxu1 }
 0x11f   : > { %v2513_v47 = vadd.f32 %v2512_v45, %v2511_v43  ;;  %v1144_v45 = vadd.f32 %v2486_v34, %v3434_v46 }
 0x120   : > { %v3497_v49 = vpop.f32.mrf.mxu0  ;;  %v2576_v52 = vpop.f32.mrf.mxu1 }
 0x121   : > { %v1181_v51 = vadd.f32 %v2513_v47, %v3434_v46  ;;  %v2577_v53 = vadd.f32 %v2576_v52, %v2575_v48  ;;  %v2550_v47 = vadd.f32 %v3445_v58, %v3441_v55  ;;  %v2556_v58 = vadd.f32 %v3462_v8, %v3458_v5 }
 0x122   : > { %v3500_v57 = vpop.f32.mrf.mxu0  ;;  %v3502_v59 = vpop.f32.mrf.mxu1 }
 0x123   : > { %v3504_v60 = vadd.f32 %v2577_v53, %v1181_v51  ;;  %v1241_v54 = vadd.f32 %v2550_v47, %v1144_v45 }
 0x124   : > { %v2517_v61 = vpop.f32.mrf.mxu0  ;;  %v3506_v62 = vpop.f32.mrf.mxu1 }
 0x126   : > { %v2518_v63 = vpop.f32.mrf.mxu0  ;;  %v2581_v2 = vpop.f32.mrf.mxu1 }
 0x127   : > { %v2519_v1 = vadd.f32 %v2518_v63, %v2517_v61  ;;  %v2492_v63 = vadd.f32 %v3456_v4, %v3453_v0 }
 0x128   : > { %v3508_v3 = vpop.f32.mrf.mxu0  ;;  %v2582_v9 = vpop.f32.mrf.mxu1 }
 0x129   : > { %v1189_v7 = vadd.f32 %v2519_v1, %v3434_v46  ;;  %v2583_v10 = vadd.f32 %v2582_v9, %v2581_v2  ;;  %v1152_v55 = vadd.f32 %v2492_v63, %v3434_v46 }
 0x12a   : > { %v3511_v11 = vpop.f32.mrf.mxu0  ;;  %v3513_v13 = vpop.f32.mrf.mxu1 }
 0x12b   : > { %v3515_v14 = vadd.f32 %v2583_v10, %v1189_v7  ;;  %v1249_v34 = vadd.f32 %v2556_v58, %v1152_v55 }
 0x12c   : > { %v2523_v15 = vpop.f32.mrf.mxu0  ;;  %v3517_v19 = vpop.f32.mrf.mxu1 }
 0x12e   : > { %v2524_v21 = vpop.f32.mrf.mxu0  ;;  %v2587_v23 = vpop.f32.mrf.mxu1 }
 0x12f   : > { %v2525_v22 = vadd.f32 %v2524_v21, %v2523_v15 }
 0x130   : > { %v3519_v25 = vpop.f32.mrf.mxu0  ;;  %v2588_v27 = vpop.f32.mrf.mxu1 }
 0x131   : > { %v1197_v26 = vadd.f32 %v2525_v22, %v3434_v46  ;;  %v2589_v31 = vadd.f32 %v2588_v27, %v2587_v23 }
 0x132   : > { %v3522_v33 = vpop.f32.mrf.mxu0  ;;  %v3526_v35 = vpop.f32.mrf.mxu1 }
 0x133   : > { %v3528_v37 = vadd.f32 %v2589_v31, %v1197_v26 }
 0x134   : > { %v2609_v38 = vpop.f32.mrf.mxu0  ;;  %v3530_v39 = vpop.f32.mrf.mxu1 }
 0x136   : > { %v2610_v43 = vpop.f32.mrf.mxu0  ;;  %v2706_v51 = vpop.f32.mrf.mxu1 }
 0x137   : > { %v2611_v48 = vadd.f32 %v2610_v43, %v2609_v38  ;;  %v2498_v38 = vadd.f32 %v3467_v16, %v3464_v12 }
 0x138   : > { %v2612_v52 = vpop.f32.mrf.mxu0  ;;  %v1431_v61 = vpop.f32.mrf.mxu1 }
 0x139   : > { %v1335_v53 = vadd.f32 %v2611_v48, %v3443_v56 }
 0x13a   : > { %v2613_v50 = vpop.f32.mrf.mxu0  ;;  %v2707_v2 = vpop.f32.mrf.mxu1 }
 0x13b   : > { %v2614_v1 = vadd.f32 %v2613_v50, %v2612_v52  ;;  %v1432_v9 = vadd.f32 %v1431_v61, %v1335_v53  ;;  %v1160_v53 = vadd.f32 %v2498_v38, %v3434_v46 }
 0x13c   : > { %v2615_v7 = vpop.f32.mrf.mxu0  ;;  %v1434_v15 = vpop.f32.mrf.mxu1 }
 0x13d   : > { %v1338_v10 = vadd.f32 %v2614_v1, %v1241_v54  ;;  %v1494_v27 = vmax.f32 %v1432_v9, 0.0 }
 0x13e   : > { %v2616_v21 = vpop.f32.mrf.mxu0  ;;  %v2710_v26 = vpop.f32.mrf.mxu1 }
 0x13f   : > { %v2617_v22 = vadd.f32 %v2616_v21, %v2615_v7  ;;  %v1435_v56 = vadd.f32 %v1434_v15, %v1338_v10 }
 0x140   : > { %v2618_v23 = vpop.f32.mrf.mxu0  ;;  %v1447_v48 = vpop.f32.mrf.mxu1 }
 0x141   : > { %v1343_v31 = vadd.f32 %v2617_v22, %v3460_v6  ;;  %v1495_v0 = vmax.f32 %v1435_v56, 0.0  ;;  %v2562_v6 = vadd.f32 %v3473_v20, %v3469_v17  ;;  %v2568_v22 = vadd.f32 %v3484_v32, %v3480_v29 }
 0x142   : > { %v2619_v4 = vpop.f32.mrf.mxu0  ;;  %v2711_v63 = vpop.f32.mrf.mxu1 }
 0x143   : > { %v1510_v43 = vpack.c.bf16 %v1495_v0, %v1494_v27  ;;  %v2620_v45 = vadd.f32 %v2619_v4, %v2618_v23  ;;  %v1440_v52 = vadd.f32 %v2706_v51, %v1343_v31  ;;  %v1257_v9 = vadd.f32 %v2562_v6, %v1160_v53 }
 0x144   : > { %v2621_v47 = vpop.f32.mrf.mxu0  ;;  %v2504_v51 = vadd.f32 %v3478_v28, %v3475_v24  ;;  %v1450_v55 = vpop.f32.mrf.mxu1 }
 0x145   : > { %v1346_v5 = vadd.f32 %v2620_v45, %v1249_v34  ;;  %2728 = vmatprep.mubr.msk.bf16.mxu1 %vm1557_vm1, %v1510_v43  ;;  %v1496_v1 = vmax.f32 %v1440_v52, 0.0  ;;  %v2510_v34 = vadd.f32 %v3489_v40, %v3486_v36 }
 0x146   : > { %v2622_v8 = vpop.f32.mrf.mxu0  ;;  %v2714_v27 = vpop.f32.mrf.mxu1 }
 0x147   : > { %v1443_v61 = vadd.f32 %v2707_v2, %v1346_v5  ;;  %v2623_v50 = vadd.f32 %v2622_v8, %v2621_v47  ;;  %v1168_v2 = vadd.f32 %v2504_v51, %v3434_v46  ;;  %v1176_v32 = vadd.f32 %v2510_v34, %v3434_v46 }
 0x148   : > { %v2624_v54 = vpop.f32.mrf.mxu0  ;;  %v1463_v47 = vpop.f32.mrf.mxu1  ;;  %v2580_v51 = vadd.f32 %v3506_v62, %v3502_v59 }
 0x149   : > { %v1497_v12 = vmax.f32 %v1443_v61, 0.0  ;;  %v1351_v16 = vadd.f32 %v2623_v50, %v3471_v18  ;;  %v1265_v4 = vadd.f32 %v2568_v22, %v1168_v2 }
 0x14a   : > { %v2625_v7 = vpop.f32.mrf.mxu0  ;;  %v2715_v6 = vpop.f32.mrf.mxu1 }
 0x14b   : > { %v1511_v10 = vpack.c.bf16 %v1497_v12, %v1496_v1  ;;  %v2626_v15 = vadd.f32 %v2625_v7, %v2624_v54  ;;  %v1448_v58 = vadd.f32 %v1447_v48, %v1351_v16 }
 0x14c   : > { %v2627_v21 = vpop.f32.mrf.mxu0  ;;  %v1466_v7 = vpop.f32.mrf.mxu1 }
 0x14d   : > { %2729 = vmatmul.mubr.msk.bf16.vlgmr.msra.gmra.mxu1 %vm1557_vm1, %v1511_v10  ;;  %v1354_v17 = vadd.f32 %v2626_v15, %v1257_v9  ;;  %v1498_v31 = vmax.f32 %v1448_v58, 0.0 }
 0x14e   : > { %v2628_v20 = vpop.f32.mrf.mxu0 }
 0x14f   : > { %v2629_v18 = vadd.f32 %v2628_v20, %v2627_v21  ;;  %v1451_v56 = vadd.f32 %v1450_v55, %v1354_v17  ;;  %v2718_v21 = vpop.f32.mrf.mxu1  ;;  %v2522_v20 = vadd.f32 %v3511_v11, %v3508_v3 }
 0x150   : > { %v2630_v23 = vpop.f32.mrf.mxu0 }
 0x151   : > { %v1359_v24 = vadd.f32 %v2629_v18, %v3482_v30  ;;  %v1499_v28 = vmax.f32 %v1451_v56, 0.0  ;;  %v2574_v30 = vadd.f32 %v3495_v44, %v3491_v41  ;;  %v1479_v56 = vpop.f32.mrf.mxu1  ;;  %v1192_v62 = vadd.f32 %v2522_v20, %v3434_v46 }
 0x152   : > { %v2631_v0 = vpop.f32.mrf.mxu0 }
 0x153   : > { %v1512_v38 = vpack.c.bf16 %v1499_v28, %v1498_v31  ;;  %v2632_v43 = vadd.f32 %v2631_v0, %v2630_v23  ;;  %v1456_v48 = vadd.f32 %v2710_v26, %v1359_v24  ;;  %v1273_v54 = vadd.f32 %v2574_v30, %v1176_v32 }
 0x154   : > { %v2633_v45 = vpop.f32.mrf.mxu0  ;;  %v2516_v26 = vadd.f32 %v3500_v57, %v3497_v49  ;;  %v2592_v30 = vadd.f32 %v3530_v39, %v3526_v35  ;;  %v2969_v35 = vld [vmem:[%s3802_s5 + $0x8] sm:$0xff]   ;;  %v2971_v39 = vld [vmem:[%s3804_s7 + $0x18] sm:$0xff]  }
 0x155   : > { %v1362_v52 = vadd.f32 %v2632_v43, %v1265_v4  ;;  %2732 = vmatprep.mubr.msk.bf16.mxu1 %vm1557_vm1, %v1512_v38  ;;  %v1500_v61 = vmax.f32 %v1456_v48, 0.0  ;;  %v2719_v4 = vpop.f32.mrf.mxu1  ;;  %2748 = vmatprep.subr.bf16.mxu0 %v2969_v35 }
 0x156   : > { %v2634_v29 = vpop.f32.mrf.mxu0  ;;  %2749 = vmatpush3.bf16.msra.mxu0 %v2969_v35  ;;  %2768 = vmatprep.subr.bf16.mxu1 %v2971_v39 }
 0x157   : > { %v1459_v5 = vadd.f32 %v2711_v63, %v1362_v52  ;;  %v2635_v8 = vadd.f32 %v2634_v29, %v2633_v45  ;;  %v1184_v63 = vadd.f32 %v2516_v26, %v3434_v46  ;;  %v1482_v52 = vpop.f32.mrf.mxu1  ;;  %2769 = vmatpush3.bf16.msra.mxu1 %v2971_v39 }
 0x158   : > { %v2636_v53 = vpop.f32.mrf.mxu0 }
 0x159   : > { %v1501_v36 = vmax.f32 %v1459_v5, 0.0  ;;  %v1367_v40 = vadd.f32 %v2635_v8, %v3493_v42  ;;  %v1281_v17 = vadd.f32 %v2580_v51, %v1184_v63 }
 0x15a   : > { %v2637_v50 = vpop.f32.mrf.mxu0 }
 0x15b   : > { %v1513_v1 = vpack.c.bf16 %v1501_v36, %v1500_v61  ;;  %v2638_v12 = vadd.f32 %v2637_v50, %v2636_v53  ;;  %v1464_v9 = vadd.f32 %v1463_v47, %v1367_v40 }
 0x15c   : > { %v2639_v16 = vpop.f32.mrf.mxu0 }
 0x15d   : > { %2733 = vmatmul.mubr.msk.bf16.gmra.mxu1 %vm1557_vm1, %v1513_v1  ;;  %v1370_v41 = vadd.f32 %v2638_v12, %v1273_v54  ;;  %v1502_v55 = vmax.f32 %v1464_v9, 0.0  ;;  %v2420_v9 = vld [vmem:[%s3801_s4] ss:$0 sm:$0xff] }
 0x15e   : > { %v2640_v44 = vpop.f32.mrf.mxu0 }
 0x15f   : > { %v2641_v42 = vadd.f32 %v2640_v44, %v2639_v16  ;;  %v1467_v10 = vadd.f32 %v1466_v7, %v1370_v41 }
 0x160   : > { %v2642_v15 = vpop.f32.mrf.mxu0 }
 0x161   : > { %v1375_v49 = vadd.f32 %v2641_v42, %v3504_v60  ;;  %v1503_v57 = vmax.f32 %v1467_v10, 0.0  ;;  %v2586_v60 = vadd.f32 %v3517_v19, %v3513_v13 }
 0x162   : > { %v2643_v58 = vpop.f32.mrf.mxu0 }
 0x163   : > { %v1514_v2 = vpack.c.bf16 %v1503_v57, %v1502_v55  ;;  %v2644_v22 = vadd.f32 %v2643_v58, %v2642_v15  ;;  %v1472_v23 = vadd.f32 %v2714_v27, %v1375_v49  ;;  %v1289_v43 = vadd.f32 %v2586_v60, %v1192_v62 }
 0x164   : > { %v2645_v18 = vpop.f32.mrf.mxu0  ;;  %v2528_v27 = vadd.f32 %v3522_v33, %v3519_v25 }
 0x165   : > { %v1378_v31 = vadd.f32 %v2644_v22, %v1281_v17  ;;  %2736 = vmatprep.mubr.msk.bf16.mxu1 %vm1557_vm1, %v1514_v2  ;;  %v1504_v34 = vmax.f32 %v1472_v23, 0.0 }
 0x166   : > { %v2646_v59 = vpop.f32.mrf.mxu0  ;;  %v1200_v32 = vadd.f32 %v2528_v27, %v3434_v46 }
 0x167   : > { %v1475_v24 = vadd.f32 %v2715_v6, %v1378_v31  ;;  %v2647_v28 = vadd.f32 %v2646_v59, %v2645_v18 }
 0x168   : > { %v2648_v0 = vpop.f32.mrf.mxu0  ;;  %v1297_v61 = vadd.f32 %v2592_v30, %v1200_v32 }
 0x169   : > { %v1505_v3 = vmax.f32 %v1475_v24, 0.0  ;;  %v1383_v11 = vadd.f32 %v2647_v28, %v3515_v14 }
 0x16a   : > { %v2649_v38 = vpop.f32.mrf.mxu0 }
 0x16b   : > { %v1515_v45 = vpack.c.bf16 %v1505_v3, %v1504_v34  ;;  %v2650_v47 = vadd.f32 %v2649_v38, %v2648_v0  ;;  %v1480_v29 = vadd.f32 %v1479_v56, %v1383_v11 }
 0x16c   : > { %v2651_v48 = vpop.f32.mrf.mxu0 }
 0x16d   : > { %2737 = vmatmul.mubr.msk.bf16.gmra.mxu1 %vm1557_vm1, %v1515_v45  ;;  %v1386_v13 = vadd.f32 %v2650_v47, %v1289_v43  ;;  %v1506_v53 = vmax.f32 %v1480_v29, 0.0 }
 0x16e   : > { %v2652_v19 = vpop.f32.mrf.mxu0 }
 0x16f   : > { %v2653_v14 = vadd.f32 %v2652_v19, %v2651_v48  ;;  %v1483_v5 = vadd.f32 %v1482_v52, %v1386_v13 }
 0x170   : > { %v2654_v8 = vpop.f32.mrf.mxu0 }
 0x171   : > { %v1391_v25 = vadd.f32 %v2653_v14, %v3528_v37  ;;  %v1507_v33 = vmax.f32 %v1483_v5, 0.0  ;;  %v2970_v37 = vld [vmem:[%s3802_s5] sm:$0xff]  }
 0x172   : > { %v2655_v6 = vpop.f32.mrf.mxu0  ;;  %2750 = vmatprep.subr.bf16.mxu0 %v2970_v37 }
 0x173   : > { %v1516_v36 = vpack.c.bf16 %v1507_v33, %v1506_v53  ;;  %v2656_v40 = vadd.f32 %v2655_v6, %v2654_v8  ;;  %v1488_v50 = vadd.f32 %v2718_v21, %v1391_v25  ;;  %2751 = vmatpush3.bf16.msra.mxu0 %v2970_v37  ;;  %v2433_v37 = vld [vmem:[%s3803_s6] ss:$0 sm:$0xff] }
 0x175   : > { %v1394_v54 = vadd.f32 %v2656_v40, %v1297_v61  ;;  %2740 = vmatprep.mubr.msk.bf16.mxu1 %vm1557_vm1, %v1516_v36  ;;  %v1508_v46 = vmax.f32 %v1488_v50, 0.0 }
 0x177   : > { %v1491_v26 = vadd.f32 %v2719_v4, %v1394_v54 }
 0x179   : > { %v1509_v1 = vmax.f32 %v1491_v26, 0.0  ;;  %v2972_v26 = vld [vmem:[%s3804_s7 + $0x10] sm:$0xff]  }
 0x17a   : > { %2770 = vmatprep.subr.bf16.mxu1 %v2972_v26 }
 0x17b   : > { %v1517_v12 = vpack.c.bf16 %v1509_v1, %v1508_v46  ;;  %2771 = vmatpush3.bf16.msra.mxu1 %v2972_v26  ;;  %v2973_v46 = vld [vmem:[%s3804_s7 + $0x8] sm:$0xff]   ;;  %v2974_v1 = vld [vmem:[%s3804_s7] sm:$0xff]  }
 0x17c   : > { %2772 = vmatprep.subr.bf16.mxu1 %v2973_v46 }
 0x17d   : > { %2741 = vmatmul.mubr.msk.bf16.gmra.mxu1 %vm1557_vm1, %v1517_v12 }
 0x17f   : > { %2773 = vmatpush3.bf16.msra.mxu1 %v2973_v46 }
 0x180   : > { %2774 = vmatprep.subr.bf16.mxu1 %v2974_v1 }
 0x183   : > { %2775 = vmatpush3.bf16.msra.mxu1 %v2974_v1 }
 0x20d   : > { %v2730_v16 = vpop.f32.mrf.mxu1 }
 0x20e   : > { %v1625_v51 = vadd.f32 %v2730_v16, %v2420_v9 }
 0x20f   : > { %v1616_v7 = vpop.f32.mrf.mxu1 }
 0x210   : > { %v1617_v44 = vadd.f32 %v2420_v9, %v1616_v7  ;;  %v1681_v49 = vmax.f32 %v1625_v51, 0.0 }
 0x211   : > { %v2731_v41 = vpop.f32.mrf.mxu1 }
 0x212   : > { %v1628_v63 = vadd.f32 %v2731_v41, %v2420_v9  ;;  %v1679_v21 = vmax.f32 %v1617_v44, 0.0 }
 0x213   : > { %v1619_v42 = vpop.f32.mrf.mxu1 }
 0x214   : > { %v1620_v10 = vadd.f32 %v2420_v9, %v1619_v42  ;;  %v1682_v15 = vmax.f32 %v1628_v63, 0.0 }
 0x216   : > { %v1680_v55 = vmax.f32 %v1620_v10, 0.0  ;;  %v1696_v58 = vpack.c.bf16 %v1682_v15, %v1681_v49 }
 0x218   : > { %v1695_v57 = vpack.c.bf16 %v1680_v55, %v1679_v21 }
 0x21a   : > { %2752 = vmatprep.mubr.msk.bf16.mxu0 %vm1557_vm1, %v1695_v57 }
 0x21b   : > { %2753 = vmatmul.mubr.msk.bf16.vlgmr.msra.gmra.mxu0 %vm1557_vm1, %v1696_v58 }
 0x21d   : > { %v2734_v17 = vpop.f32.mrf.mxu1 }
 0x21e   : > { %v1641_v56 = vadd.f32 %v2734_v17, %v2420_v9 }
 0x21f   : > { %v1632_v20 = vpop.f32.mrf.mxu1 }
 0x220   : > { %v1633_v22 = vadd.f32 %v2420_v9, %v1632_v20  ;;  %v1685_v24 = vmax.f32 %v1641_v56, 0.0 }
 0x221   : > { %v2735_v2 = vpop.f32.mrf.mxu1 }
 0x222   : > { %v1644_v18 = vadd.f32 %v2735_v2, %v2420_v9  ;;  %v1683_v62 = vmax.f32 %v1633_v22, 0.0 }
 0x223   : > { %v1635_v23 = vpop.f32.mrf.mxu1 }
 0x224   : > { %v1636_v31 = vadd.f32 %v2420_v9, %v1635_v23  ;;  %v1686_v59 = vmax.f32 %v1644_v18, 0.0 }
 0x226   : > { %v1684_v60 = vmax.f32 %v1636_v31, 0.0  ;;  %v1698_v0 = vpack.c.bf16 %v1686_v59, %v1685_v24 }
 0x228   : > { %v1697_v28 = vpack.c.bf16 %v1684_v60, %v1683_v62 }
 0x22a   : > { %2756 = vmatprep.mubr.msk.bf16.mxu0 %vm1557_vm1, %v1697_v28 }
 0x22b   : > { %2757 = vmatmul.mubr.msk.bf16.gmra.mxu0 %vm1557_vm1, %v1698_v0 }
 0x22d   : > { %v2738_v4 = vpop.f32.mrf.mxu1 }
 0x22e   : > { %v1657_v43 = vadd.f32 %v2738_v4, %v2420_v9 }
 0x22f   : > { %v1648_v34 = vpop.f32.mrf.mxu1 }
 0x230   : > { %v1649_v11 = vadd.f32 %v2420_v9, %v1648_v34  ;;  %v1689_v29 = vmax.f32 %v1657_v43, 0.0 }
 0x231   : > { %v2739_v3 = vpop.f32.mrf.mxu1 }
 0x232   : > { %v1660_v38 = vadd.f32 %v2739_v3, %v2420_v9  ;;  %v1687_v48 = vmax.f32 %v1649_v11, 0.0 }
 0x233   : > { %v1651_v27 = vpop.f32.mrf.mxu1 }
 0x234   : > { %v1652_v45 = vadd.f32 %v2420_v9, %v1651_v27  ;;  %v1690_v47 = vmax.f32 %v1660_v38, 0.0 }
 0x236   : > { %v1688_v52 = vmax.f32 %v1652_v45, 0.0  ;;  %v1700_v19 = vpack.c.bf16 %v1690_v47, %v1689_v29 }
 0x238   : > { %v1699_v13 = vpack.c.bf16 %v1688_v52, %v1687_v48 }
 0x23a   : > { %2760 = vmatprep.mubr.msk.bf16.mxu0 %vm1557_vm1, %v1699_v13 }
 0x23b   : > { %2761 = vmatmul.mubr.msk.bf16.gmra.mxu0 %vm1557_vm1, %v1700_v19 }
 0x23d   : > { %v2742_v32 = vpop.f32.mrf.mxu1 }
 0x23e   : > { %v1673_v53 = vadd.f32 %v2742_v32, %v2420_v9 }
 0x23f   : > { %v1664_v30 = vpop.f32.mrf.mxu1 }
 0x240   : > { %v1665_v5 = vadd.f32 %v2420_v9, %v1664_v30  ;;  %v1693_v40 = vmax.f32 %v1673_v53, 0.0 }
 0x241   : > { %v2743_v14 = vpop.f32.mrf.mxu1 }
 0x242   : > { %v1676_v8 = vadd.f32 %v2743_v14, %v2420_v9  ;;  %v1691_v61 = vmax.f32 %v1665_v5, 0.0 }
 0x243   : > { %v1667_v25 = vpop.f32.mrf.mxu1 }
 0x244   : > { %v1668_v33 = vadd.f32 %v2420_v9, %v1667_v25  ;;  %v1694_v6 = vmax.f32 %v1676_v8, 0.0 }
 0x246   : > { %v1692_v36 = vmax.f32 %v1668_v33, 0.0  ;;  %v1702_v54 = vpack.c.bf16 %v1694_v6, %v1693_v40 }
 0x248   : > { %v1701_v50 = vpack.c.bf16 %v1692_v36, %v1691_v61  ;;  %v2446_v36 = vld [vmem:[%s3805_s8] ss:$0 sm:$0xff] }
 0x24a   : > { %2764 = vmatprep.mubr.msk.bf16.mxu0 %vm1557_vm1, %v1701_v50 }
 0x24b   : > { %2765 = vmatmul.mubr.msk.bf16.gmra.mxu0 %vm1557_vm1, %v1702_v54 }
 0x2db   : > { %v2754_v12 = vpop.f32.mrf.mxu0 }
 0x2dc   : > { %v1809_v9 = vadd.f32 %v2754_v12, %v2433_v37 }
 0x2dd   : > { %v1800_v35 = vpop.f32.mrf.mxu0 }
 0x2de   : > { %v1801_v16 = vadd.f32 %v2433_v37, %v1800_v35  ;;  %v1865_v10 = vmax.f32 %v1809_v9, 0.0 }
 0x2df   : > { %v2755_v39 = vpop.f32.mrf.mxu0 }
 0x2e0   : > { %v1812_v7 = vadd.f32 %v2755_v39, %v2433_v37  ;;  %v1863_v51 = vmax.f32 %v1801_v16, 0.0 }
 0x2e1   : > { %v1803_v41 = vpop.f32.mrf.mxu0 }
 0x2e2   : > { %v1804_v44 = vadd.f32 %v2433_v37, %v1803_v41  ;;  %v1866_v63 = vmax.f32 %v1812_v7, 0.0 }
 0x2e4   : > { %v1864_v42 = vmax.f32 %v1804_v44, 0.0  ;;  %v1880_v21 = vpack.c.bf16 %v1866_v63, %v1865_v10 }
 0x2e6   : > { %v1879_v15 = vpack.c.bf16 %v1864_v42, %v1863_v51 }
 0x2e8   : > { %2776 = vmatprep.mubr.msk.bf16.mxu1 %vm1557_vm1, %v1879_v15 }
 0x2e9   : > { %2777 = vmatmul.mubr.msk.bf16.vlgmr.msra.gmra.mxu1 %vm1557_vm1, %v1880_v21 }
 0x2eb   : > { %v2758_v55 = vpop.f32.mrf.mxu0 }
 0x2ec   : > { %v1825_v20 = vadd.f32 %v2758_v55, %v2433_v37 }
 0x2ed   : > { %v1816_v49 = vpop.f32.mrf.mxu0 }
 0x2ee   : > { %v1817_v58 = vadd.f32 %v2433_v37, %v1816_v49  ;;  %v1869_v31 = vmax.f32 %v1825_v20, 0.0 }
 0x2ef   : > { %v2759_v57 = vpop.f32.mrf.mxu0 }
 0x2f0   : > { %v1828_v17 = vadd.f32 %v2759_v57, %v2433_v37  ;;  %v1867_v56 = vmax.f32 %v1817_v58, 0.0 }
 0x2f1   : > { %v1819_v2 = vpop.f32.mrf.mxu0 }
 0x2f2   : > { %v1820_v22 = vadd.f32 %v2433_v37, %v1819_v2  ;;  %v1870_v18 = vmax.f32 %v1828_v17, 0.0 }
 0x2f4   : > { %v1868_v23 = vmax.f32 %v1820_v22, 0.0  ;;  %v1882_v62 = vpack.c.bf16 %v1870_v18, %v1869_v31 }
 0x2f6   : > { %v1881_v59 = vpack.c.bf16 %v1868_v23, %v1867_v56 }
 0x2f8   : > { %2780 = vmatprep.mubr.msk.bf16.mxu1 %vm1557_vm1, %v1881_v59 }
 0x2f9   : > { %2781 = vmatmul.mubr.msk.bf16.gmra.mxu1 %vm1557_vm1, %v1882_v62 }
 0x2fb   : > { %v2762_v60 = vpop.f32.mrf.mxu0 }
 0x2fc   : > { %v1841_v34 = vadd.f32 %v2762_v60, %v2433_v37 }
 0x2fd   : > { %v1832_v24 = vpop.f32.mrf.mxu0 }
 0x2fe   : > { %v1833_v0 = vadd.f32 %v2433_v37, %v1832_v24  ;;  %v1873_v45 = vmax.f32 %v1841_v34, 0.0 }
 0x2ff   : > { %v2763_v28 = vpop.f32.mrf.mxu0 }
 0x300   : > { %v1844_v4 = vadd.f32 %v2763_v28, %v2433_v37  ;;  %v1871_v43 = vmax.f32 %v1833_v0, 0.0 }
 0x301   : > { %v1835_v3 = vpop.f32.mrf.mxu0 }
 0x302   : > { %v1836_v11 = vadd.f32 %v2433_v37, %v1835_v3  ;;  %v1874_v38 = vmax.f32 %v1844_v4, 0.0 }
 0x304   : > { %v1872_v27 = vmax.f32 %v1836_v11, 0.0  ;;  %v1884_v48 = vpack.c.bf16 %v1874_v38, %v1873_v45 }
 0x306   : > { %v1883_v47 = vpack.c.bf16 %v1872_v27, %v1871_v43 }
 0x308   : > { %2784 = vmatprep.mubr.msk.bf16.mxu1 %vm1557_vm1, %v1883_v47 }
 0x309   : > { %2785 = vmatmul.mubr.msk.bf16.gmra.mxu1 %vm1557_vm1, %v1884_v48 }
 0x30b   : > { %v2766_v52 = vpop.f32.mrf.mxu0 }
 0x30c   : > { %v1857_v30 = vadd.f32 %v2766_v52, %v2433_v37 }
 0x30d   : > { %v1848_v29 = vpop.f32.mrf.mxu0 }
 0x30e   : > { %v1849_v19 = vadd.f32 %v2433_v37, %v1848_v29  ;;  %v1877_v33 = vmax.f32 %v1857_v30, 0.0 }
 0x30f   : > { %v2767_v13 = vpop.f32.mrf.mxu0 }
 0x310   : > { %v1860_v32 = vadd.f32 %v2767_v13, %v2433_v37  ;;  %v1875_v53 = vmax.f32 %v1849_v19, 0.0 }
 0x311   : > { %v1851_v14 = vpop.f32.mrf.mxu0 }
 0x312   : > { %v1852_v5 = vadd.f32 %v2433_v37, %v1851_v14  ;;  %v1878_v8 = vmax.f32 %v1860_v32, 0.0 }
 0x314   : > { %v1876_v25 = vmax.f32 %v1852_v5, 0.0  ;;  %v1886_v61 = vpack.c.bf16 %v1878_v8, %v1877_v33 }
 0x316   : > { %v1885_v6 = vpack.c.bf16 %v1876_v25, %v1875_v53 }
 0x318   : > { %2788 = vmatprep.mubr.msk.bf16.mxu1 %vm1557_vm1, %v1885_v6 }
 0x319   : > { %2789 = vmatmul.mubr.msk.bf16.gmra.mxu1 %vm1557_vm1, %v1886_v61 }
 0x3a9   : > { %v2778_v40 = vpop.f32.mrf.mxu1 }
 0x3aa   : > { %v1993_v50 = vadd.f32 %v2778_v40, %v2446_v36 }
 0x3ab   : > { %v1984_v54 = vpop.f32.mrf.mxu1 }
 0x3ac   : > { %v1985_v26 = vadd.f32 %v2446_v36, %v1984_v54  ;;  %2051 = vmax.xlane.f32.xlu1 %v1993_v50 }
 0x3ad   : > { %v2779_v46 = vpop.f32.mrf.mxu1 }
 0x3ae   : > { %v1996_v1 = vadd.f32 %v2779_v46, %v2446_v36  ;;  %2047 = vmax.xlane.f32.xlu0 %v1985_v26 }
 0x3af   : > { %v1987_v12 = vpop.f32.mrf.mxu1 }
 0x3b0   : > { %v1988_v35 = vadd.f32 %v2446_v36, %v1987_v12  ;;  %2053 = vmax.xlane.f32.xlu1 %v1996_v1 }
 0x3b2   : > { %2049 = vmax.xlane.f32.xlu0 %v1988_v35 }
 0x3b9   : > { %v2782_v37 = vpop.f32.mrf.mxu1 }
 0x3ba   : > { %v2009_v39 = vadd.f32 %v2782_v37, %v2446_v36 }
 0x3bb   : > { %v2000_v16 = vpop.f32.mrf.mxu1 }
 0x3bc   : > { %2059 = vmax.xlane.f32.xlu0 %v2009_v39  ;;  %v2001_v9 = vadd.f32 %v2446_v36, %v2000_v16 }
 0x3bd   : > { %v2783_v7 = vpop.f32.mrf.mxu1 }
 0x3be   : > { %v2012_v41 = vadd.f32 %v2783_v7, %v2446_v36 }
 0x3bf   : > { %v2003_v44 = vpop.f32.mrf.mxu1 }
 0x3c0   : > { %2061 = vmax.xlane.f32.xlu1 %v2012_v41  ;;  %2055 = vmax.xlane.f32.xlu0 %v2001_v9  ;;  %v2004_v63 = vadd.f32 %v2446_v36, %v2003_v44 }
 0x3c4   : > { %2057 = vmax.xlane.f32.xlu1 %v2004_v63 }
 0x3c9   : > { %v2786_v51 = vpop.f32.mrf.mxu1 }
 0x3ca   : > { %v3629_v42 = vadd.f32 %v2786_v51, %v2446_v36 }
 0x3cb   : > { %v2016_v10 = vpop.f32.mrf.mxu1 }
 0x3cc   : > { %2067 = vmax.xlane.f32.xlu0 %v3629_v42  ;;  %v3632_v21 = vadd.f32 %v2446_v36, %v2016_v10 }
 0x3cd   : > { %v2787_v15 = vpop.f32.mrf.mxu1 }
 0x3ce   : > { %v3634_v55 = vadd.f32 %v2787_v15, %v2446_v36 }
 0x3cf   : > { %v2019_v49 = vpop.f32.mrf.mxu1 }
 0x3d0   : > { %2069 = vmax.xlane.f32.xlu1 %v3634_v55  ;;  %2063 = vmax.xlane.f32.xlu0 %v3632_v21  ;;  %v3638_v57 = vadd.f32 %v2446_v36, %v2019_v49 }
 0x3d4   : > { %2065 = vmax.xlane.f32.xlu1 %v3638_v57 }
 0x3d9   : > { %v2790_v58 = vpop.f32.mrf.mxu1 }
 0x3da   : > { %v3644_v18 = vadd.f32 %v2790_v58, %v2446_v36 }
 0x3db   : > { %v2032_v17 = vpop.f32.mrf.mxu1 }
 0x3dc   : > { %v3641_v20 = vadd.f32 %v2446_v36, %v2032_v17 }
 0x3dd   : > { %v2791_v2 = vpop.f32.mrf.mxu1 }
 0x3de   : > { %2071 = vmax.xlane.f32.xlu0 %v3641_v20  ;;  %v3650_v23 = vadd.f32 %v2791_v2, %v2446_v36 }
 0x3df   : > { %v2035_v22 = vpop.f32.mrf.mxu1 }
 0x3e0   : > { %v3646_v56 = vadd.f32 %v2446_v36, %v2035_v22 }
 0x3e2   : > { %2073 = vmax.xlane.f32.xlu1 %v3646_v56  ;;  %2075 = vmax.xlane.f32.xlu0 %v3644_v18 }
 0x3e6   : > { %2077 = vmax.xlane.f32.xlu1 %v3650_v23 }
 0x435   : > { %v2052_v31 = vpop.xlane.xlu1 %2051 }
 0x436   : > { %v3653_v59 = vsub.f32 %v1993_v50, %v2052_v31 }
 0x437   : > { %v2048_v62 = vpop.xlane.xlu0 %2047 }
 0x438   : > { %v2099_v60 = vmul.f32 1.442695, %v3653_v59  ;;  %v3656_v24 = vsub.f32 %v1985_v26, %v2048_v62 }
 0x439   : > { %v2054_v28 = vpop.xlane.xlu1 %2053 }
 0x43a   : > { %2975 = vpow2.f32 %v2099_v60  ;;  %v2095_v0 = vmul.f32 1.442695, %v3656_v24  ;;  %v3659_v4 = vsub.f32 %v1996_v1, %v2054_v28 }
 0x43b   : > { %v2050_v34 = vpop.xlane.xlu0 %2049 }
 0x43c   : > { %v2101_v3 = vmul.f32 1.442695, %v3659_v4  ;;  %v3662_v11 = vsub.f32 %v1988_v35, %v2050_v34  ;;  %2977 = vpow2.f32 %v2095_v0 }
 0x43e   : > { %2979 = vpow2.f32 %v2101_v3  ;;  %v2097_v38 = vmul.f32 1.442695, %v3662_v11 }
 0x440   : > { %2981 = vpow2.f32 %v2097_v38 }
 0x445   : > { %v2060_v43 = vpop.xlane.xlu0 %2059 }
 0x446   : > { %v3665_v27 = vsub.f32 %v2009_v39, %v2060_v43 }
 0x447   : > { %v2976_v45 = vpop.eup %2975 }
 0x448   : > { %v2107_v47 = vmul.f32 1.442695, %v3665_v27  ;;  %2131 = vadd.xlane.f32.xlu0 %v2976_v45 }
 0x449   : > { %v2062_v48 = vpop.xlane.xlu1 %2061  ;;  %v2056_v52 = vpop.xlane.xlu0 %2055 }
 0x44a   : > { %v2978_v29 = vpop.eup %2977  ;;  %2983 = vpow2.f32 %v2107_v47  ;;  %v3668_v13 = vsub.f32 %v2012_v41, %v2062_v48  ;;  %v3670_v19 = vsub.f32 %v2001_v9, %v2056_v52 }
 0x44b   : > { %v2980_v32 = vpop.eup %2979 }
 0x44c   : > { %v2109_v30 = vmul.f32 1.442695, %v3668_v13  ;;  %v2103_v14 = vmul.f32 1.442695, %v3670_v19  ;;  %2133 = vadd.xlane.f32.xlu1 %v2980_v32  ;;  %2127 = vadd.xlane.f32.xlu0 %v2978_v29 }
 0x44d   : > { %v2058_v5 = vpop.xlane.xlu1 %2057  ;;  %v2982_v53 = vpop.eup %2981 }
 0x44e   : > { %2985 = vpow2.f32 %v2109_v30  ;;  %v3674_v8 = vsub.f32 %v2004_v63, %v2058_v5 }
 0x44f   : > { %2987 = vpow2.f32 %v2103_v14 }
 0x450   : > { %v2105_v25 = vmul.f32 1.442695, %v3674_v8  ;;  %2129 = vadd.xlane.f32.xlu1 %v2982_v53 }
 0x452   : > { %2989 = vpow2.f32 %v2105_v25 }
 0x455   : > { %v2068_v33 = vpop.xlane.xlu0 %2067 }
 0x456   : > { %v3678_v6 = vsub.f32 %v3629_v42, %v2068_v33 }
 0x457   : > { %v2984_v61 = vpop.eup %2983 }
 0x458   : > { %v2115_v36 = vmul.f32 1.442695, %v3678_v6  ;;  %2139 = vadd.xlane.f32.xlu0 %v2984_v61 }
 0x459   : > { %v2070_v40 = vpop.xlane.xlu1 %2069  ;;  %v2064_v50 = vpop.xlane.xlu0 %2063 }
 0x45a   : > { %2991 = vpow2.f32 %v2115_v36  ;;  %v3682_v54 = vsub.f32 %v3634_v55, %v2070_v40  ;;  %v3685_v26 = vsub.f32 %v3632_v21, %v2064_v50 }
 0x45b   : > { %v2986_v46 = vpop.eup %2985 }
 0x45c   : > { %v2988_v1 = vpop.eup %2987  ;;  %v2117_v12 = vmul.f32 1.442695, %v3682_v54  ;;  %v2111_v35 = vmul.f32 1.442695, %v3685_v26  ;;  %2141 = vadd.xlane.f32.xlu1 %v2986_v46 }
 0x45d   : > { %2135 = vadd.xlane.f32.xlu0 %v2988_v1  ;;  %v2066_v37 = vpop.xlane.xlu1 %2065 }
 0x45e   : > { %2993 = vpow2.f32 %v2117_v12  ;;  %v3690_v39 = vsub.f32 %v3638_v57, %v2066_v37 }
 0x45f   : > { %v2990_v16 = vpop.eup %2989  ;;  %2995 = vpow2.f32 %v2111_v35 }
 0x460   : > { %v2113_v7 = vmul.f32 1.442695, %v3690_v39  ;;  %2137 = vadd.xlane.f32.xlu1 %v2990_v16 }
 0x462   : > { %2997 = vpow2.f32 %v2113_v7 }
 0x467   : > { %v2992_v9 = vpop.eup %2991  ;;  %v2072_v41 = vpop.xlane.xlu0 %2071 }
 0x468   : > { %v3694_v44 = vsub.f32 %v3641_v20, %v2072_v41  ;;  %2147 = vadd.xlane.f32.xlu0 %v2992_v9 }
 0x46a   : > { %v2119_v63 = vmul.f32 1.442695, %v3694_v44 }
 0x46b   : > { %v2994_v51 = vpop.eup %2993  ;;  %v2074_v42 = vpop.xlane.xlu1 %2073 }
 0x46c   : > { %v2076_v10 = vpop.xlane.xlu0 %2075  ;;  %v2996_v15 = vpop.eup %2995  ;;  %2999 = vpow2.f32 %v2119_v63  ;;  %v3698_v21 = vsub.f32 %v3646_v56, %v2074_v42  ;;  %2149 = vadd.xlane.f32.xlu1 %v2994_v51 }
 0x46d   : > { %v3701_v55 = vsub.f32 %v3644_v18, %v2076_v10  ;;  %2143 = vadd.xlane.f32.xlu0 %v2996_v15 }
 0x46e   : > { %v2121_v49 = vmul.f32 1.442695, %v3698_v21 }
 0x46f   : > { %v2123_v57 = vmul.f32 1.442695, %v3701_v55  ;;  %v2998_v58 = vpop.eup %2997  ;;  %v2078_v17 = vpop.xlane.xlu1 %2077 }
 0x470   : > { %3001 = vpow2.f32 %v2121_v49  ;;  %v3706_v20 = vsub.f32 %v3650_v23, %v2078_v17  ;;  %2145 = vadd.xlane.f32.xlu1 %v2998_v58 }
 0x471   : > { %3003 = vpow2.f32 %v2123_v57 }
 0x472   : > { %v2125_v2 = vmul.f32 1.442695, %v3706_v20 }
 0x474   : > { %3005 = vpow2.f32 %v2125_v2 }
 0x479   : > { %v3000_v22 = vpop.eup %2999 }
 0x47a   : > { %2151 = vadd.xlane.f32.xlu0 %v3000_v22 }
 0x47d   : > { %v3002_v18 = vpop.eup %3001 }
 0x47e   : > { %v3004_v56 = vpop.eup %3003  ;;  %2153 = vadd.xlane.f32.xlu1 %v3002_v18 }
 0x47f   : > { %2155 = vadd.xlane.f32.xlu0 %v3004_v56 }
 0x481   : > { %v3006_v31 = vpop.eup %3005 }
 0x482   : > { %2157 = vadd.xlane.f32.xlu1 %v3006_v31 }
 0x4d1   : > { %v2132_v62 = vpop.xlane.xlu0 %2131 }
 0x4d2   : > { %3007 = vlog2.f32 %v2132_v62 }
 0x4d5   : > { %v2134_v60 = vpop.xlane.xlu1 %2133  ;;  %v2128_v23 = vpop.xlane.xlu0 %2127 }
 0x4d6   : > { %3009 = vlog2.f32 %v2134_v60 }
 0x4d7   : > { %3011 = vlog2.f32 %v2128_v23 }
 0x4d9   : > { %v2130_v28 = vpop.xlane.xlu1 %2129 }
 0x4da   : > { %3013 = vlog2.f32 %v2130_v28 }
 0x4df   : > { %v3008_v0 = vpop.eup %3007 }
 0x4e0   : > { %v2164_v34 = vmul.f32 0.6931472, %v3008_v0 }
 0x4e1   : > { %v2140_v3 = vpop.xlane.xlu0 %2139 }
 0x4e2   : > { %v2193_v38 = vsub.f32 %v3653_v59, %v2164_v34  ;;  %3015 = vlog2.f32 %v2140_v3 }
 0x4e3   : > { %v3010_v43 = vpop.eup %3009 }
 0x4e4   : > { %v3012_v45 = vpop.eup %3011  ;;  %2209 = vst [vmem:[%s3713_s16 + $0x10] sm:$0xff] %v2193_v38  ;;  %v2166_v47 = vmul.f32 0.6931472, %v3010_v43 }
 0x4e5   : > { %v2160_v48 = vmul.f32 0.6931472, %v3012_v45  ;;  %v2142_v52 = vpop.xlane.xlu1 %2141 }
 0x4e6   : > { %v2194_v29 = vsub.f32 %v3659_v4, %v2166_v47  ;;  %3017 = vlog2.f32 %v2142_v52  ;;  %v2136_v32 = vpop.xlane.xlu0 %2135 }
 0x4e7   : > { %v3014_v30 = vpop.eup %3013  ;;  %v2191_v59 = vsub.f32 %v3656_v24, %v2160_v48  ;;  %3019 = vlog2.f32 %v2136_v32 }
 0x4e8   : > { %2210 = vst [vmem:[%s3713_s16 + $0x18] sm:$0xff] %v2194_v29  ;;  %v2162_v14 = vmul.f32 0.6931472, %v3014_v30 }
 0x4e9   : > { %2207 = vst [vmem:[%s3713_s16] sm:$0xff] %v2191_v59  ;;  %v2138_v5 = vpop.xlane.xlu1 %2137 }
 0x4ea   : > { %v2192_v53 = vsub.f32 %v3662_v11, %v2162_v14  ;;  %3021 = vlog2.f32 %v2138_v5 }
 0x4ec   : > { %2208 = vst [vmem:[%s3713_s16 + $0x8] sm:$0xff] %v2192_v53 }
 0x4ef   : > { %v3016_v25 = vpop.eup %3015 }
 0x4f0   : > { %v2172_v33 = vmul.f32 0.6931472, %v3016_v25 }
 0x4f1   : > { %v2148_v61 = vpop.xlane.xlu0 %2147 }
 0x4f2   : > { %v2197_v4 = vsub.f32 %v3665_v27, %v2172_v33  ;;  %3023 = vlog2.f32 %v2148_v61 }
 0x4f3   : > { %v3018_v36 = vpop.eup %3017 }
 0x4f4   : > { %v3020_v24 = vpop.eup %3019  ;;  %2213 = vst [vmem:[%s3713_s16 + $0x30] sm:$0xff] %v2197_v4  ;;  %v2174_v40 = vmul.f32 0.6931472, %v3018_v36 }
 0x4f5   : > { %v2168_v50 = vmul.f32 0.6931472, %v3020_v24  ;;  %v2150_v46 = vpop.xlane.xlu1 %2149 }
 0x4f6   : > { %v2198_v1 = vsub.f32 %v3668_v13, %v2174_v40  ;;  %3025 = vlog2.f32 %v2150_v46  ;;  %v2144_v11 = vpop.xlane.xlu0 %2143 }
 0x4f7   : > { %v3022_v12 = vpop.eup %3021  ;;  %v2195_v35 = vsub.f32 %v3670_v19, %v2168_v50  ;;  %3027 = vlog2.f32 %v2144_v11 }
 0x4f8   : > { %2214 = vst [vmem:[%s3713_s16 + $0x38] sm:$0xff] %v2198_v1  ;;  %v2170_v27 = vmul.f32 0.6931472, %v3022_v12 }
 0x4f9   : > { %2211 = vst [vmem:[%s3713_s16 + $0x20] sm:$0xff] %v2195_v35  ;;  %v2146_v37 = vpop.xlane.xlu1 %2145 }
 0x4fa   : > { %v2196_v16 = vsub.f32 %v3674_v8, %v2170_v27  ;;  %3029 = vlog2.f32 %v2146_v37 }
 0x4fc   : > { %2212 = vst [vmem:[%s3713_s16 + $0x28] sm:$0xff] %v2196_v16 }
 0x4ff   : > { %v3024_v7 = vpop.eup %3023 }
 0x500   : > { %v2180_v9 = vmul.f32 0.6931472, %v3024_v7 }
 0x502   : > { %v2201_v13 = vsub.f32 %v3678_v6, %v2180_v9 }
 0x503   : > { %v3026_v41 = vpop.eup %3025  ;;  %v2152_v63 = vpop.xlane.xlu0 %2151 }
 0x504   : > { %v3028_v51 = vpop.eup %3027  ;;  %2217 = vst [vmem:[%s3713_s16 + $0x50] sm:$0xff] %v2201_v13  ;;  %v2182_v19 = vmul.f32 0.6931472, %v3026_v41  ;;  %3031 = vlog2.f32 %v2152_v63 }
 0x505   : > { %v2176_v42 = vmul.f32 0.6931472, %v3028_v51 }
 0x506   : > { %v2202_v10 = vsub.f32 %v3682_v54, %v2182_v19 }
 0x507   : > { %v3030_v15 = vpop.eup %3029  ;;  %v2199_v8 = vsub.f32 %v3685_v26, %v2176_v42  ;;  %v2154_v49 = vpop.xlane.xlu1 %2153 }
 0x508   : > { %2218 = vst [vmem:[%s3713_s16 + $0x58] sm:$0xff] %v2202_v10  ;;  %v2178_v57 = vmul.f32 0.6931472, %v3030_v15  ;;  %3033 = vlog2.f32 %v2154_v49  ;;  %v2156_v6 = vpop.xlane.xlu0 %2155 }
 0x509   : > { %2215 = vst [vmem:[%s3713_s16 + $0x40] sm:$0xff] %v2199_v8  ;;  %3035 = vlog2.f32 %v2156_v6 }
 0x50a   : > { %v2200_v58 = vsub.f32 %v3690_v39, %v2178_v57 }
 0x50b   : > { %v2158_v17 = vpop.xlane.xlu1 %2157 }
 0x50c   : > { %2216 = vst [vmem:[%s3713_s16 + $0x48] sm:$0xff] %v2200_v58  ;;  %3037 = vlog2.f32 %v2158_v17 }
 0x511   : > { %v3032_v54 = vpop.eup %3031 }
 0x512   : > { %v2184_v2 = vmul.f32 0.6931472, %v3032_v54 }
 0x514   : > { %v2203_v26 = vsub.f32 %v3694_v44, %v2184_v2 }
 0x515   : > { %v3034_v22 = vpop.eup %3033 }
 0x516   : > { %v3036_v18 = vpop.eup %3035  ;;  %2219 = vst [vmem:[%s3713_s16 + $0x60] sm:$0xff] %v2203_v26  ;;  %v2186_v56 = vmul.f32 0.6931472, %v3034_v22 }
 0x517   : > { %v2188_v31 = vmul.f32 0.6931472, %v3036_v18 }
 0x518   : > { %v2204_v62 = vsub.f32 %v3698_v21, %v2186_v56 }
 0x519   : > { %v3038_v39 = vpop.eup %3037  ;;  %v2205_v60 = vsub.f32 %v3701_v55, %v2188_v31 }
 0x51a   : > { %2220 = vst [vmem:[%s3713_s16 + $0x68] sm:$0xff] %v2204_v62  ;;  %v2190_v23 = vmul.f32 0.6931472, %v3038_v39 }
 0x51b   : > { %2221 = vst [vmem:[%s3713_s16 + $0x70] sm:$0xff] %v2205_v60 }
 0x51c   : > { %v2206_v44 = vsub.f32 %v3706_v20, %v2190_v23 }
 0x51e   : > { %2222 = vst [vmem:[%s3713_s16 + $0x78] sm:$0xff] %v2206_v44 }
 0x51f   : > { %3052 = shalt.err (!%p3049_p3)
}
 0x520   : > { %s3053_s14 = scalar_lea.hbm %s3749_s23, 2048  ;;  %s3057_s17 = scalar_lea.hbm %s3806_s9, 6144 }
 0x521   : > { %p3054_p4 = scmp.ne.s32.totalorder %s3749_s23, %s3053_s14  ;;  %p3058_p9 = scmp.lt.s32.totalorder %s3749_s23, %s3806_s9 }
 0x522   : > { %p3059_p10 = scmp.lt.s32.totalorder %s3057_s17, %s3053_s14 }
 0x523   : > { %p3055_p7 = pnand %p3054_p4, %p3192_p5 }
 0x524   : > { %p3060_p11 = por %p3059_p10, %p3058_p9 }
 0x525   : > { %p3056_p8 = pneg %p3055_p7 }
 0x527   : > { %p3061_p12 = pnand %p3060_p11, %p3056_p8 }
 0x529   : > { %3064 = shalt.err (!%p3061_p12)
}
 0x52a   : > { %s3102_s27 = smov 128   ;;  %s3103_s28 = smov 8  }
 0x52b   : > { %2793 = dma.vmem_to_hbm [thread:$0]  (%p3192_p5), %s3751_s21, 2048, %s3749_s23, %s3757_s13, %s3102_s27, %s3102_s27, %s3103_s28  }
 0x52c PF: > { %p2799_p13 = scmp.ge.s32.totalorder %s3099_s12, 2  ;;  %s2252_s24 = sand.u32 1, %s3087_s30  }
 0x52d   : > { %s2253_s29 = scalar_lea.sflag [#allocation3], %s2252_s24 }
 0x52e   : > { %p2796_p0 = pnand %p2799_p13, %p3196_p6 }
 0x530   : > { %p2797_p1 = pneg %p2796_p0 }
 0x532   : > { %3082 = dma.done.wait (%p2797_p1), %s2253_s29, 2048  }
 0x533   : > { %3084 = vsyncadd (%p2797_p1), %s2253_s29, 4294965248  ;;  %p19_p2 = scmp.ge.s32.totalorder %s3179_s15, 5   ;;  %s3809_s30 = smov %s3091_s10 }
 0x534   : > { %s3810_s10 = smov %s3095_s11  ;;  %s3811_s11 = smov %s3190_s18 }
 0x535   : > { %s3812_s12 = smov %s3179_s15  ;;  %21 = sbr.rel (!%p19_p2) target bundleno = 3 (0x3), region = 91 }
 0x53a   :  { %2258 = vsyncpa [#allocation3], 1 }
 0x53b   :  { %2260 = vsyncpa [#allocation3 + $0x1], 1 }

</bundles_post_ra>
